<compile_context>
chip_gen: v7x
topology: tpu7x:2x2x1
jax: 0.10.0
libtpu: 0.0.40
codegen_flags: <defaults>
</compile_context>

<pallas_src>
import functools

import jax
import jax.numpy as jnp
import numpy as np
from jax import lax
from jax.experimental import pallas as pl
from jax.experimental.pallas import tpu as pltpu

# Inter-kernel activation storage dtype.  jnp.bfloat16 halves the r write/read
# HBM streams on v6e/v7x (matmuls/stats stay f32); kept f32 here so the self-
# test tolerance vs. the f32 reference stays tight.
R_DTYPE = jnp.float32

_UNROLL_CAP = 32      # max input rows unrolled inside kernel 1


# ---------------------------------------------------------------------------
# Kernel 1: ConvTranspose2d + Conv2d(1x1) + (implicit concat) + ReLU
#           + per-tile partial BN statistics
# ---------------------------------------------------------------------------

def _fused_conv_relu_stats_kernel(up_ref, x_ref, wu_ref, bu_ref, wx_ref,
                                  bx_ref, scat_ref, r_ref, psum_ref, pssq_ref,
                                  *, up_out, th, w):
    n_out = r_ref.shape[1]

    # ---- 1x1-conv branch: one lane-dense matmul + ReLU, stored straight into
    #      the upper channel half (no in-kernel concatenate).
    xv = x_ref[0]                                                    # (Cx, lout)
    out_x = jnp.dot(wx_ref[...], xv, preferred_element_type=jnp.float32)
    out_x = jnp.maximum(out_x + bx_ref[...], 0.0)
    r_ref[0, up_out:n_out, :] = out_x.astype(r_ref.dtype)

    psum_x = jnp.sum(out_x, axis=-1, keepdims=True)                  # (x_out, 1)
    pssq_x = jnp.sum(out_x * out_x, axis=-1, keepdims=True)

    # ---- transposed-conv branch, one input row at a time.  Input row r feeds
    #      exactly output rows 2r / 2r+1, which are one contiguous 4W chunk of
    #      the row-major output, so a constant (W, 4W) scatter matmul per
    #      sub-pixel places everything directly in output order (no relayouts,
    #      no quadratic scatter constant; MXU has huge headroom here).
    wu = [wu_ref[k] for k in range(4)]        # (up_out, Cu) each
    sc = [scat_ref[k] for k in range(4)]      # (W, 4W) each
    bu = bu_ref[...]                          # (up_out, 1)

    psum_u = jnp.zeros((up_out, 1), jnp.float32)
    pssq_u = jnp.zeros((up_out, 1), jnp.float32)
    for r in range(th):                       # static unroll (th kept small)
        u_r = up_ref[0, :, r * w:(r + 1) * w]                        # (Cu, W)
        o_r = bu
        for k in range(4):
            y = jnp.dot(wu[k], u_r, preferred_element_type=jnp.float32)
            o_r = o_r + jnp.dot(y, sc[k], preferred_element_type=jnp.float32)
        o_r = jnp.maximum(o_r, 0.0)                                  # (up_out, 4W)
        r_ref[0, 0:up_out, r * 4 * w:(r + 1) * 4 * w] = o_r.astype(r_ref.dtype)
        psum_u = psum_u + jnp.sum(o_r, axis=-1, keepdims=True)
        pssq_u = pssq_u + jnp.sum(o_r * o_r, axis=-1, keepdims=True)

    # Per-(batch, tile) partial stats; channels stay on sublanes (lane-width-1
    # stores, negligible absolute cost — a lane-dense stats layout would need
    # an in-kernel transpose of the reduction results).
    psum_ref[0, 0, 0:up_out, :] = psum_u
    psum_ref[0, 0, up_out:n_out, :] = psum_x
    pssq_ref[0, 0, 0:up_out, :] = pssq_u
    pssq_ref[0, 0, up_out:n_out, :] = pssq_x


# ---------------------------------------------------------------------------
# Kernel 2: BN affine apply (streaming, in place over the ReLU buffer)
# ---------------------------------------------------------------------------

def _bn_apply_kernel(r_ref, scale_ref, shift_ref, o_ref):
    o_ref[0] = r_ref[0].astype(jnp.float32) * scale_ref[...] + shift_ref[...]


# ---------------------------------------------------------------------------
# Helpers
# ---------------------------------------------------------------------------

def _subpixel_row_scatter(w):
    """S[k, j, a*2W + 2j + b] = 1 with k = 2a + b: places sub-pixel (a, b) of
    input column j into the contiguous 4W output chunk of one input row."""
    s = np.zeros((4, w, 4 * w), np.float32)
    j = np.arange(w)
    for k in range(4):
        a, b = k // 2, k % 2
        s[k, j, a * 2 * w + 2 * j + b] = 1.0
    return jnp.asarray(s)


def _vmem_capacity():
    try:
        return int(pltpu.get_tpu_info().vmem_capacity_bytes)
    except Exception:
        return 64 * 1024 * 1024      # conservative (v7x-sized) fallback


def _vmem_limit(cap, needed):
    limit = max(int(0.70 * cap), needed + (8 << 20))
    return int(min(limit, int(0.90 * cap)))


def _pick_row_tile(h, w, cu, cx, n_out, r_bytes, budget, batch):
    """Input rows per grid step: largest divisor of h whose double-buffered
    in/out blocks fit the VMEM budget, with 128-aligned (or full) lane extents."""
    def block_bytes(t):
        lin, lout = t * w, 4 * t * w
        return 2 * (cu * lin * 4 + cx * lout * 4 + n_out * lout * r_bytes)

    cands = [t for t in range(1, h + 1)
             if h % t == 0 and ((t * w) % 128 == 0 or t == h)]
    fits = [t for t in cands if block_bytes(t) <= budget]
    if not fits:
        return min(cands)
    capped = [t for t in fits if t <= _UNROLL_CAP] or fits
    th = max(capped)
    # Keep >=2 grid steps when it's cheap (megacore / v7x dual-TC balance).
    if batch * (h // th) < 2:
        alt = [t for t in capped if (h // t) >= 2 and t * w >= 256]
        if alt:
            th = max(alt)
    return th


def _pick_lane_tile(l, n_out, r_bytes, budget):
    """Lane tile for the BN-apply pass: largest 128-aligned divisor of l (or l
    itself) whose double-buffered in+out blocks fit the budget."""
    def block_bytes(t):
        return 2 * n_out * t * (r_bytes + 4)
    cands = [t for t in range(128, l, 128) if l % t == 0] + [l]
    fits = [t for t in cands if block_bytes(t) <= budget]
    return max(fits) if fits else min(cands)


# ---------------------------------------------------------------------------
# UNet_Up_Block forward
# ---------------------------------------------------------------------------

@functools.partial(jax.jit, static_argnames=("eps",))
def unet_up_block(up_p, x_p, params, eps=1e-5):
    """up_p: (N, up_in, H, W), x_p: (N, x_in, 2H, 2W) -> (N, n_out, 2H, 2W)."""
    n, cu, h, w = up_p.shape
    _, cx, h2, w2 = x_p.shape
    up_out = params["tr_w"].shape[1]            # tr_w: (up_in, up_out, 2, 2)
    x_out = params["x_w"].shape[0]              # x_w : (x_out, x_in, 1, 1)
    n_out = up_out + x_out
    assert h2 == 2 * h and w2 == 2 * w

    # Free reshapes only (contiguous dim merges): stay channels-first.
    up_flat = up_p.reshape(n, cu, h * w)
    x_flat = x_p.reshape(n, cx, h2 * w2)

    # Tiny weight repacks (activations are never transposed).
    wu = jnp.transpose(params["tr_w"], (2, 3, 1, 0)).reshape(4, up_out, cu)
    bu = params["tr_b"].reshape(up_out, 1)
    wx = params["x_w"][:, :, 0, 0]
    bx = params["x_b"].reshape(x_out, 1)

    # Tile sizes derived from the actual per-core VMEM capacity.
    r_bytes = jnp.dtype(R_DTYPE).itemsize
    cap = _vmem_capacity()
    # TODO(synk): mark the grid-invariant operands (wu/bu/wx/bx/scat) with
    # pipeline_mode=pl.Buffered(1) to drop their second buffer; budgeted as 2x here.
    weights_vmem = 2 * 4 * (4 * up_out * cu + up_out + x_out * cx + x_out
                            + 4 * w * 4 * w)
    budget = max(int(0.40 * cap) - weights_vmem, 1 << 20)
    th = _pick_row_tile(h, w, cu, cx, n_out, r_bytes, budget, n)
    n_tiles = h // th
    lin, lout = th * w, 4 * th * w
    scat = _subpixel_row_scatter(w)

    blocks1 = 2 * (cu * lin * 4 + cx * lout * 4 + n_out * lout * r_bytes)
    kernel1 = functools.partial(_fused_conv_relu_stats_kernel,
                                up_out=up_out, th=th, w=w)

    r, psum, pssq = pl.pallas_call(
        kernel1,
        out_shape=(
            jax.ShapeDtypeStruct((n, n_out, h2 * w2), R_DTYPE),
            jax.ShapeDtypeStruct((n, n_tiles, n_out, 1), jnp.float32),
            jax.ShapeDtypeStruct((n, n_tiles, n_out, 1), jnp.float32),
        ),
        grid_spec=pltpu.PrefetchScalarGridSpec(
            num_scalar_prefetch=0,
            grid=(n, n_tiles),
            in_specs=[
                pl.BlockSpec((1, cu, lin), lambda i, t: (i, 0, t)),
                pl.BlockSpec((1, cx, lout), lambda i, t: (i, 0, t)),
                pl.BlockSpec((4, up_out, cu), lambda i, t: (0, 0, 0)),
                pl.BlockSpec((up_out, 1), lambda i, t: (0, 0)),
                pl.BlockSpec((x_out, cx), lambda i, t: (0, 0)),
                pl.BlockSpec((x_out, 1), lambda i, t: (0, 0)),
                pl.BlockSpec((4, w, 4 * w), lambda i, t: (0, 0, 0)),
            ],
            out_specs=[
                pl.BlockSpec((1, n_out, lout), lambda i, t: (i, 0, t)),
                pl.BlockSpec((1, 1, n_out, 1), lambda i, t: (i, t, 0, 0)),
                pl.BlockSpec((1, 1, n_out, 1), lambda i, t: (i, t, 0, 0)),
            ],
        ),
        compiler_params=pltpu.CompilerParams(
            dimension_semantics=("parallel", "parallel"),
            vmem_limit_bytes=_vmem_limit(cap, blocks1 + weights_vmem)),
    )(up_flat, x_flat, wu, bu, wx, bx, scat)

    # Finalize BatchNorm batch statistics (tiny per-channel math, f32).
    count = jnp.float32(n * h2 * w2)
    ch_sum = jnp.sum(psum, axis=(0, 1))          # (n_out, 1)
    ch_ssq = jnp.sum(pssq, axis=(0, 1))
    mean = ch_sum / count
    # One-pass biased variance; clamped at 0 against f32 cancellation.
    var = jnp.maximum(ch_ssq / count - mean * mean, 0.0)
    scale = params["bn_gamma"].reshape(n_out, 1) * lax.rsqrt(var + eps)
    shift = params["bn_beta"].reshape(n_out, 1) - mean * scale

    tl = _pick_lane_tile(h2 * w2, n_out, r_bytes, int(0.40 * cap))
    blocks2 = 2 * n_out * tl * (r_bytes + 4)
    io_alias = {0: 0} if R_DTYPE == jnp.float32 else {}

    y = pl.pallas_call(
        _bn_apply_kernel,
        out_shape=jax.ShapeDtypeStruct((n, n_out, h2 * w2), jnp.float32),
        grid_spec=pltpu.PrefetchScalarGridSpec(
            num_scalar_prefetch=0,
            grid=(n, (h2 * w2) // tl),
            in_specs=[
                pl.BlockSpec((1, n_out, tl), lambda i, t: (i, 0, t)),
                pl.BlockSpec((n_out, 1), lambda i, t: (0, 0)),
                pl.BlockSpec((n_out, 1), lambda i, t: (0, 0)),
            ],
            out_specs=pl.BlockSpec((1, n_out, tl), lambda i, t: (i, 0, t)),
        ),
        input_output_aliases=io_alias,           # BN applied in place over r
        compiler_params=pltpu.CompilerParams(
            dimension_semantics=("parallel", "parallel"),
            vmem_limit_bytes=_vmem_limit(cap, blocks2)),
    )(r, scale, shift)

    return y.reshape(n, n_out, h2, w2)           # free reshape back to NCHW


# ---------------------------------------------------------------------------
# Pure-jnp reference (same math, different code path) for validation
# ---------------------------------------------------------------------------

def ref_forward(up_p, x_p, params, eps=1e-5):
    n, cu, h, w = up_p.shape
    up_out = params["tr_w"].shape[1]
    # ConvTranspose2d k=2 s=2
    y = jnp.einsum("ncij,coab->noiajb", up_p, params["tr_w"])
    y = y.reshape(n, up_out, 2 * h, 2 * w) + params["tr_b"][None, :, None, None]
    # Conv2d 1x1
    xy = jnp.einsum("nchw,oc->nohw", x_p, params["x_w"][:, :, 0, 0])
    xy = xy + params["x_b"][None, :, None, None]
    cat = jnp.concatenate([y, xy], axis=1)
    r = jnp.maximum(cat, 0.0)
    mean = r.mean(axis=(0, 2, 3), keepdims=True)
    var = ((r - mean) ** 2).mean(axis=(0, 2, 3), keepdims=True)
    gamma = params["bn_gamma"][None, :, None, None]
    beta = params["bn_beta"][None, :, None, None]
    return (r - mean) * lax.rsqrt(var + eps) * gamma + beta


# ---------------------------------------------------------------------------

if __name__ == "__main__":
    # Module config: UNet_Up_Block(up_in=8, x_in=8, n_out=8)  ->  up_out = x_out = 4
    up_in, x_in, n_out = 8, 8, 8
    up_out = x_out = n_out // 2
    N, H, W = 2, 8, 8                 # up_p spatial; x_p / output spatial is (16, 16)

    key = jax.random.PRNGKey(0)
    k1, k2, k3, k4, k5, k6, k7, k8 = jax.random.split(key, 8)

    params = {
        "tr_w": 0.1 * jax.random.normal(k1, (up_in, up_out, 2, 2), jnp.float32),
        "tr_b": 0.1 * jax.random.normal(k2, (up_out,), jnp.float32),
        "x_w": 0.1 * jax.random.normal(k3, (x_out, x_in, 1, 1), jnp.float32),
        "x_b": 0.1 * jax.random.normal(k4, (x_out,), jnp.float32),
        "bn_gamma": 1.0 + 0.1 * jax.random.normal(k7, (n_out,), jnp.float32),
        "bn_beta": 0.1 * jax.random.normal(k8, (n_out,), jnp.float32),
    }

    up_p = jax.random.normal(k5, (N, up_in, H, W), jnp.float32)
    x_p = jax.random.normal(k6, (N, x_in, 2 * H, 2 * W), jnp.float32)

    out = jax.block_until_ready(unet_up_block(up_p, x_p, params))
    ref = ref_forward(up_p, x_p, params)

    assert out.shape == (N, n_out, 2 * H, 2 * W)
    max_err = float(jnp.max(jnp.abs(out - ref)))
    # Tolerance covers MXU f32 matmul rounding differences between the kernel
    # and the XLA reference path; real bugs show up as O(0.1-1) errors here.
    assert jnp.allclose(out, ref, atol=2e-3, rtol=2e-3), f"mismatch vs reference: {max_err}"

    print("KERNEL_OK")
</pallas_src>

<mosaic_0001>
module attributes {stable_mosaic.version = 11 : i64} {
  func.func @_bn_apply_kernel(%arg0: i32, %arg1: i32, %arg2: memref<1x8x256xf32, #tpu.memory_space<vmem>>, %arg3: memref<8x1xf32, #tpu.memory_space<vmem>>, %arg4: memref<8x1xf32, #tpu.memory_space<vmem>>, %arg5: memref<1x8x256xf32, #tpu.memory_space<vmem>>) attributes {dimension_semantics = [#tpu.dimension_semantics<parallel>, #tpu.dimension_semantics<parallel>], iteration_bounds = array<i64: 2, 1>, scalar_prefetch = 0 : i64, scratch_operands = 0 : i64, tpu.core_type = #tpu.core_type<tc>, window_params = [{transform_indices = @transform_0, window_bounds = array<i64: 1, 8, 256>}, {pipeline_mode = #tpu.pipeline_mode<synchronous>, transform_indices = @transform_1, window_bounds = array<i64: 8, 1>}, {pipeline_mode = #tpu.pipeline_mode<synchronous>, transform_indices = @transform_2, window_bounds = array<i64: 8, 1>}, {transform_indices = @transform_3, window_bounds = array<i64: 1, 8, 256>}]} {
    %c0 = arith.constant 0 : index
    %c0_0 = arith.constant 0 : index
    %c0_1 = arith.constant 0 : index
    %0 = vector.load %arg2[%c0, %c0_0, %c0_1] : memref<1x8x256xf32, #tpu.memory_space<vmem>>, vector<1x8x256xf32>
    %1 = vector.shape_cast %0 : vector<1x8x256xf32> to vector<8x256xf32>
    %c0_2 = arith.constant 0 : index
    %c0_3 = arith.constant 0 : index
    %2 = vector.load %arg3[%c0_2, %c0_3] : memref<8x1xf32, #tpu.memory_space<vmem>>, vector<8x1xf32>
    %3 = vector.broadcast %2 : vector<8x1xf32> to vector<8x256xf32>
    %4 = arith.mulf %1, %3 : vector<8x256xf32>
    %c0_4 = arith.constant 0 : index
    %c0_5 = arith.constant 0 : index
    %5 = vector.load %arg4[%c0_4, %c0_5] : memref<8x1xf32, #tpu.memory_space<vmem>>, vector<8x1xf32>
    %6 = vector.broadcast %5 : vector<8x1xf32> to vector<8x256xf32>
    %7 = arith.addf %4, %6 : vector<8x256xf32>
    %c0_6 = arith.constant 0 : index
    %c0_7 = arith.constant 0 : index
    %c0_8 = arith.constant 0 : index
    %8 = vector.load %arg5[%c0_6, %c0_7, %c0_8] : memref<1x8x256xf32, #tpu.memory_space<vmem>>, vector<1x8x256xf32>
    %9 = vector.shape_cast %8 : vector<1x8x256xf32> to vector<8x256xf32>
    %10 = vector.shape_cast %7 : vector<8x256xf32> to vector<1x8x256xf32>
    tpu.vector_store %arg5[%c0_6, %c0_7, %c0_8], %10 {strides = array<i32>} : memref<1x8x256xf32, #tpu.memory_space<vmem>>, vector<1x8x256xf32>,
    return
  }
  func.func @transform_0(%arg0: i32, %arg1: i32) -> (i32, i32, i32) {
    %c0_i32 = arith.constant 0 : i32
    %c0_i32_0 = arith.constant 0 : i32
    return %arg0, %c0_i32, %arg1 : i32, i32, i32
  }
  func.func @transform_1(%arg0: i32, %arg1: i32) -> (i32, i32) {
    %c0_i32 = arith.constant 0 : i32
    %c0_i32_0 = arith.constant 0 : i32
    %c0_i32_1 = arith.constant 0 : i32
    return %c0_i32, %c0_i32_0 : i32, i32
  }
  func.func @transform_2(%arg0: i32, %arg1: i32) -> (i32, i32) {
    %c0_i32 = arith.constant 0 : i32
    %c0_i32_0 = arith.constant 0 : i32
    %c0_i32_1 = arith.constant 0 : i32
    return %c0_i32, %c0_i32_0 : i32, i32
  }
  func.func @transform_3(%arg0: i32, %arg1: i32) -> (i32, i32, i32) {
    %c0_i32 = arith.constant 0 : i32
    %c0_i32_0 = arith.constant 0 : i32
    return %arg0, %c0_i32, %arg1 : i32, i32, i32
  }
}

module attributes {stable_mosaic.version = 11 : i64} {
  func.func @_fused_conv_relu_stats_kernel(%arg0: i32, %arg1: i32, %arg2: memref<1x8x64xf32, #tpu.memory_space<vmem>>, %arg3: memref<1x8x256xf32, #tpu.memory_space<vmem>>, %arg4: memref<4x4x8xf32, #tpu.memory_space<vmem>>, %arg5: memref<4x1xf32, #tpu.memory_space<vmem>>, %arg6: memref<4x8xf32, #tpu.memory_space<vmem>>, %arg7: memref<4x1xf32, #tpu.memory_space<vmem>>, %arg8: memref<4x8x32xf32, #tpu.memory_space<vmem>>, %arg9: memref<1x8x256xf32, #tpu.memory_space<vmem>>, %arg10: memref<1x1x8x1xf32, #tpu.memory_space<vmem>>, %arg11: memref<1x1x8x1xf32, #tpu.memory_space<vmem>>) attributes {dimension_semantics = [#tpu.dimension_semantics<parallel>, #tpu.dimension_semantics<parallel>], iteration_bounds = array<i64: 2, 1>, scalar_prefetch = 0 : i64, scratch_operands = 0 : i64, tpu.core_type = #tpu.core_type<tc>, window_params = [{transform_indices = @transform_0, window_bounds = array<i64: 1, 8, 64>}, {transform_indices = @transform_1, window_bounds = array<i64: 1, 8, 256>}, {pipeline_mode = #tpu.pipeline_mode<synchronous>, transform_indices = @transform_2, window_bounds = array<i64: 4, 4, 8>}, {pipeline_mode = #tpu.pipeline_mode<synchronous>, transform_indices = @transform_3, window_bounds = array<i64: 4, 1>}, {pipeline_mode = #tpu.pipeline_mode<synchronous>, transform_indices = @transform_4, window_bounds = array<i64: 4, 8>}, {pipeline_mode = #tpu.pipeline_mode<synchronous>, transform_indices = @transform_5, window_bounds = array<i64: 4, 1>}, {pipeline_mode = #tpu.pipeline_mode<synchronous>, transform_indices = @transform_6, window_bounds = array<i64: 4, 8, 32>}, {transform_indices = @transform_7, window_bounds = array<i64: 1, 8, 256>}, {transform_indices = @transform_8, window_bounds = array<i64: 1, 1, 8, 1>}, {transform_indices = @transform_9, window_bounds = array<i64: 1, 1, 8, 1>}]} {
    %c0 = arith.constant 0 : index
    %c0_0 = arith.constant 0 : index
    %c0_1 = arith.constant 0 : index
    %0 = vector.load %arg3[%c0, %c0_0, %c0_1] : memref<1x8x256xf32, #tpu.memory_space<vmem>>, vector<1x8x256xf32>
    %1 = vector.shape_cast %0 : vector<1x8x256xf32> to vector<8x256xf32>
    %c0_2 = arith.constant 0 : index
    %c0_3 = arith.constant 0 : index
    %2 = vector.load %arg6[%c0_2, %c0_3] : memref<4x8xf32, #tpu.memory_space<vmem>>, vector<4x8xf32>
    %cst = arith.constant dense<0.000000e+00> : vector<4x256xf32>
    %3 = tpu.matmul %2, %1, %cst {dimension_numbers = #tpu.dot_dimension_numbers<[1], [0], [0], [1], [0, 0, 1, 1], [], []>} : vector<4x8xf32>, vector<8x256xf32>, vector<4x256xf32> -> vector<4x256xf32>
    %c0_4 = arith.constant 0 : index
    %c0_5 = arith.constant 0 : index
    %4 = vector.load %arg7[%c0_4, %c0_5] : memref<4x1xf32, #tpu.memory_space<vmem>>, vector<4x1xf32>
    %5 = vector.broadcast %4 : vector<4x1xf32> to vector<4x256xf32>
    %6 = arith.addf %3, %5 : vector<4x256xf32>
    %cst_6 = arith.constant 0.000000e+00 : f32
    %7 = vector.broadcast %cst_6 : f32 to vector<4x256xf32>
    %8 = arith.maximumf %6, %7 : vector<4x256xf32>
    %c0_7 = arith.constant 0 : index
    %c4 = arith.constant 4 : index
    %c0_8 = arith.constant 0 : index
    %9 = vector.load %arg9[%c0_7, %c4, %c0_8] : memref<1x8x256xf32, #tpu.memory_space<vmem>>, vector<1x4x256xf32>
    %10 = vector.shape_cast %9 : vector<1x4x256xf32> to vector<4x256xf32>
    %11 = vector.shape_cast %8 : vector<4x256xf32> to vector<1x4x256xf32>
    tpu.vector_store %arg9[%c0_7, %c4, %c0_8], %11 {strides = array<i32>} : memref<1x8x256xf32, #tpu.memory_space<vmem>>, vector<1x4x256xf32>,
    %cst_9 = arith.constant dense<0.000000e+00> : vector<4xf32>
    %12 = vector.multi_reduction <add>, %8, %cst_9 [1] : vector<4x256xf32> to vector<4xf32>
    %13 = vector.shape_cast %12 : vector<4xf32> to vector<4x1xf32>
    %14 = arith.mulf %8, %8 : vector<4x256xf32>
    %cst_10 = arith.constant dense<0.000000e+00> : vector<4xf32>
    %15 = vector.multi_reduction <add>, %14, %cst_10 [1] : vector<4x256xf32> to vector<4xf32>
    %16 = vector.shape_cast %15 : vector<4xf32> to vector<4x1xf32>
    %c0_11 = arith.constant 0 : index
    %c0_12 = arith.constant 0 : index
    %c0_13 = arith.constant 0 : index
    %17 = vector.load %arg4[%c0_11, %c0_12, %c0_13] : memref<4x4x8xf32, #tpu.memory_space<vmem>>, vector<1x4x8xf32>
    %18 = vector.shape_cast %17 : vector<1x4x8xf32> to vector<4x8xf32>
    %c1 = arith.constant 1 : index
    %c0_14 = arith.constant 0 : index
    %c0_15 = arith.constant 0 : index
    %19 = vector.load %arg4[%c1, %c0_14, %c0_15] : memref<4x4x8xf32, #tpu.memory_space<vmem>>, vector<1x4x8xf32>
    %20 = vector.shape_cast %19 : vector<1x4x8xf32> to vector<4x8xf32>
    %c2 = arith.constant 2 : index
    %c0_16 = arith.constant 0 : index
    %c0_17 = arith.constant 0 : index
    %21 = vector.load %arg4[%c2, %c0_16, %c0_17] : memref<4x4x8xf32, #tpu.memory_space<vmem>>, vector<1x4x8xf32>
    %22 = vector.shape_cast %21 : vector<1x4x8xf32> to vector<4x8xf32>
    %c3 = arith.constant 3 : index
    %c0_18 = arith.constant 0 : index
    %c0_19 = arith.constant 0 : index
    %23 = vector.load %arg4[%c3, %c0_18, %c0_19] : memref<4x4x8xf32, #tpu.memory_space<vmem>>, vector<1x4x8xf32>
    %24 = vector.shape_cast %23 : vector<1x4x8xf32> to vector<4x8xf32>
    %c0_20 = arith.constant 0 : index
    %c0_21 = arith.constant 0 : index
    %c0_22 = arith.constant 0 : index
    %25 = vector.load %arg8[%c0_20, %c0_21, %c0_22] : memref<4x8x32xf32, #tpu.memory_space<vmem>>, vector<1x8x32xf32>
    %26 = vector.shape_cast %25 : vector<1x8x32xf32> to vector<8x32xf32>
    %c1_23 = arith.constant 1 : index
    %c0_24 = arith.constant 0 : index
    %c0_25 = arith.constant 0 : index
    %27 = vector.load %arg8[%c1_23, %c0_24, %c0_25] : memref<4x8x32xf32, #tpu.memory_space<vmem>>, vector<1x8x32xf32>
    %28 = vector.shape_cast %27 : vector<1x8x32xf32> to vector<8x32xf32>
    %c2_26 = arith.constant 2 : index
    %c0_27 = arith.constant 0 : index
    %c0_28 = arith.constant 0 : index
    %29 = vector.load %arg8[%c2_26, %c0_27, %c0_28] : memref<4x8x32xf32, #tpu.memory_space<vmem>>, vector<1x8x32xf32>
    %30 = vector.shape_cast %29 : vector<1x8x32xf32> to vector<8x32xf32>
    %c3_29 = arith.constant 3 : index
    %c0_30 = arith.constant 0 : index
    %c0_31 = arith.constant 0 : index
    %31 = vector.load %arg8[%c3_29, %c0_30, %c0_31] : memref<4x8x32xf32, #tpu.memory_space<vmem>>, vector<1x8x32xf32>
    %32 = vector.shape_cast %31 : vector<1x8x32xf32> to vector<8x32xf32>
    %c0_32 = arith.constant 0 : index
    %c0_33 = arith.constant 0 : index
    %33 = vector.load %arg5[%c0_32, %c0_33] : memref<4x1xf32, #tpu.memory_space<vmem>>, vector<4x1xf32>
    %cst_34 = arith.constant 0.000000e+00 : f32
    %34 = vector.broadcast %cst_34 : f32 to vector<4x1xf32>
    %cst_35 = arith.constant 0.000000e+00 : f32
    %35 = vector.broadcast %cst_35 : f32 to vector<4x1xf32>
    %c0_36 = arith.constant 0 : index
    %c0_37 = arith.constant 0 : index
    %c0_38 = arith.constant 0 : index
    %36 = vector.load %arg2[%c0_36, %c0_37, %c0_38] : memref<1x8x64xf32, #tpu.memory_space<vmem>>, vector<1x8x8xf32>
    %37 = vector.shape_cast %36 : vector<1x8x8xf32> to vector<8x8xf32>
    %cst_39 = arith.constant dense<0.000000e+00> : vector<4x8xf32>
    %38 = tpu.matmul %18, %37, %cst_39 {dimension_numbers = #tpu.dot_dimension_numbers<[1], [0], [0], [1], [0, 0, 1, 1], [], []>} : vector<4x8xf32>, vector<8x8xf32>, vector<4x8xf32> -> vector<4x8xf32>
    %cst_40 = arith.constant dense<0.000000e+00> : vector<4x32xf32>
    %39 = tpu.matmul %38, %26, %cst_40 {dimension_numbers = #tpu.dot_dimension_numbers<[1], [0], [0], [1], [0, 0, 1, 1], [], []>} : vector<4x8xf32>, vector<8x32xf32>, vector<4x32xf32> -> vector<4x32xf32>
    %40 = vector.broadcast %33 : vector<4x1xf32> to vector<4x32xf32>
    %41 = arith.addf %40, %39 : vector<4x32xf32>
    %cst_41 = arith.constant dense<0.000000e+00> : vector<4x8xf32>
    %42 = tpu.matmul %20, %37, %cst_41 {dimension_numbers = #tpu.dot_dimension_numbers<[1], [0], [0], [1], [0, 0, 1, 1], [], []>} : vector<4x8xf32>, vector<8x8xf32>, vector<4x8xf32> -> vector<4x8xf32>
    %cst_42 = arith.constant dense<0.000000e+00> : vector<4x32xf32>
    %43 = tpu.matmul %42, %28, %cst_42 {dimension_numbers = #tpu.dot_dimension_numbers<[1], [0], [0], [1], [0, 0, 1, 1], [], []>} : vector<4x8xf32>, vector<8x32xf32>, vector<4x32xf32> -> vector<4x32xf32>
    %44 = arith.addf %41, %43 : vector<4x32xf32>
    %cst_43 = arith.constant dense<0.000000e+00> : vector<4x8xf32>
    %45 = tpu.matmul %22, %37, %cst_43 {dimension_numbers = #tpu.dot_dimension_numbers<[1], [0], [0], [1], [0, 0, 1, 1], [], []>} : vector<4x8xf32>, vector<8x8xf32>, vector<4x8xf32> -> vector<4x8xf32>
    %cst_44 = arith.constant dense<0.000000e+00> : vector<4x32xf32>
    %46 = tpu.matmul %45, %30, %cst_44 {dimension_numbers = #tpu.dot_dimension_numbers<[1], [0], [0], [1], [0, 0, 1, 1], [], []>} : vector<4x8xf32>, vector<8x32xf32>, vector<4x32xf32> -> vector<4x32xf32>
    %47 = arith.addf %44, %46 : vector<4x32xf32>
    %cst_45 = arith.constant dense<0.000000e+00> : vector<4x8xf32>
    %48 = tpu.matmul %24, %37, %cst_45 {dimension_numbers = #tpu.dot_dimension_numbers<[1], [0], [0], [1], [0, 0, 1, 1], [], []>} : vector<4x8xf32>, vector<8x8xf32>, vector<4x8xf32> -> vector<4x8xf32>
    %cst_46 = arith.constant dense<0.000000e+00> : vector<4x32xf32>
    %49 = tpu.matmul %48, %32, %cst_46 {dimension_numbers = #tpu.dot_dimension_numbers<[1], [0], [0], [1], [0, 0, 1, 1], [], []>} : vector<4x8xf32>, vector<8x32xf32>, vector<4x32xf32> -> vector<4x32xf32>
    %50 = arith.addf %47, %49 : vector<4x32xf32>
    %cst_47 = arith.constant 0.000000e+00 : f32
    %51 = vector.broadcast %cst_47 : f32 to vector<4x32xf32>
    %52 = arith.maximumf %50, %51 : vector<4x32xf32>
    %c0_48 = arith.constant 0 : index
    %c0_49 = arith.constant 0 : index
    %c0_50 = arith.constant 0 : index
    %53 = vector.load %arg9[%c0_48, %c0_49, %c0_50] : memref<1x8x256xf32, #tpu.memory_space<vmem>>, vector<1x4x32xf32>
    %54 = vector.shape_cast %53 : vector<1x4x32xf32> to vector<4x32xf32>
    %55 = vector.shape_cast %52 : vector<4x32xf32> to vector<1x4x32xf32>
    tpu.vector_store %arg9[%c0_48, %c0_49, %c0_50], %55 {strides = array<i32>} : memref<1x8x256xf32, #tpu.memory_space<vmem>>, vector<1x4x32xf32>,
    %cst_51 = arith.constant dense<0.000000e+00> : vector<4xf32>
    %56 = vector.multi_reduction <add>, %52, %cst_51 [1] : vector<4x32xf32> to vector<4xf32>
    %57 = vector.shape_cast %56 : vector<4xf32> to vector<4x1xf32>
    %58 = arith.addf %34, %57 : vector<4x1xf32>
    %59 = arith.mulf %52, %52 : vector<4x32xf32>
    %cst_52 = arith.constant dense<0.000000e+00> : vector<4xf32>
    %60 = vector.multi_reduction <add>, %59, %cst_52 [1] : vector<4x32xf32> to vector<4xf32>
    %61 = vector.shape_cast %60 : vector<4xf32> to vector<4x1xf32>
    %62 = arith.addf %35, %61 : vector<4x1xf32>
    %c0_53 = arith.constant 0 : index
    %c0_54 = arith.constant 0 : index
    %c8 = arith.constant 8 : index
    %63 = vector.load %arg2[%c0_53, %c0_54, %c8] : memref<1x8x64xf32, #tpu.memory_space<vmem>>, vector<1x8x8xf32>
    %64 = vector.shape_cast %63 : vector<1x8x8xf32> to vector<8x8xf32>
    %cst_55 = arith.constant dense<0.000000e+00> : vector<4x8xf32>
    %65 = tpu.matmul %18, %64, %cst_55 {dimension_numbers = #tpu.dot_dimension_numbers<[1], [0], [0], [1], [0, 0, 1, 1], [], []>} : vector<4x8xf32>, vector<8x8xf32>, vector<4x8xf32> -> vector<4x8xf32>
    %cst_56 = arith.constant dense<0.000000e+00> : vector<4x32xf32>
    %66 = tpu.matmul %65, %26, %cst_56 {dimension_numbers = #tpu.dot_dimension_numbers<[1], [0], [0], [1], [0, 0, 1, 1], [], []>} : vector<4x8xf32>, vector<8x32xf32>, vector<4x32xf32> -> vector<4x32xf32>
    %67 = vector.broadcast %33 : vector<4x1xf32> to vector<4x32xf32>
    %68 = arith.addf %67, %66 : vector<4x32xf32>
    %cst_57 = arith.constant dense<0.000000e+00> : vector<4x8xf32>
    %69 = tpu.matmul %20, %64, %cst_57 {dimension_numbers = #tpu.dot_dimension_numbers<[1], [0], [0], [1], [0, 0, 1, 1], [], []>} : vector<4x8xf32>, vector<8x8xf32>, vector<4x8xf32> -> vector<4x8xf32>
    %cst_58 = arith.constant dense<0.000000e+00> : vector<4x32xf32>
    %70 = tpu.matmul %69, %28, %cst_58 {dimension_numbers = #tpu.dot_dimension_numbers<[1], [0], [0], [1], [0, 0, 1, 1], [], []>} : vector<4x8xf32>, vector<8x32xf32>, vector<4x32xf32> -> vector<4x32xf32>
    %71 = arith.addf %68, %70 : vector<4x32xf32>
    %cst_59 = arith.constant dense<0.000000e+00> : vector<4x8xf32>
    %72 = tpu.matmul %22, %64, %cst_59 {dimension_numbers = #tpu.dot_dimension_numbers<[1], [0], [0], [1], [0, 0, 1, 1], [], []>} : vector<4x8xf32>, vector<8x8xf32>, vector<4x8xf32> -> vector<4x8xf32>
    %cst_60 = arith.constant dense<0.000000e+00> : vector<4x32xf32>
    %73 = tpu.matmul %72, %30, %cst_60 {dimension_numbers = #tpu.dot_dimension_numbers<[1], [0], [0], [1], [0, 0, 1, 1], [], []>} : vector<4x8xf32>, vector<8x32xf32>, vector<4x32xf32> -> vector<4x32xf32>
    %74 = arith.addf %71, %73 : vector<4x32xf32>
    %cst_61 = arith.constant dense<0.000000e+00> : vector<4x8xf32>
    %75 = tpu.matmul %24, %64, %cst_61 {dimension_numbers = #tpu.dot_dimension_numbers<[1], [0], [0], [1], [0, 0, 1, 1], [], []>} : vector<4x8xf32>, vector<8x8xf32>, vector<4x8xf32> -> vector<4x8xf32>
    %cst_62 = arith.constant dense<0.000000e+00> : vector<4x32xf32>
    %76 = tpu.matmul %75, %32, %cst_62 {dimension_numbers = #tpu.dot_dimension_numbers<[1], [0], [0], [1], [0, 0, 1, 1], [], []>} : vector<4x8xf32>, vector<8x32xf32>, vector<4x32xf32> -> vector<4x32xf32>
    %77 = arith.addf %74, %76 : vector<4x32xf32>
    %cst_63 = arith.constant 0.000000e+00 : f32
    %78 = vector.broadcast %cst_63 : f32 to vector<4x32xf32>
    %79 = arith.maximumf %77, %78 : vector<4x32xf32>
    %c0_64 = arith.constant 0 : index
    %c0_65 = arith.constant 0 : index
    %c32 = arith.constant 32 : index
    %80 = vector.load %arg9[%c0_64, %c0_65, %c32] : memref<1x8x256xf32, #tpu.memory_space<vmem>>, vector<1x4x32xf32>
    %81 = vector.shape_cast %80 : vector<1x4x32xf32> to vector<4x32xf32>
    %82 = vector.shape_cast %79 : vector<4x32xf32> to vector<1x4x32xf32>
    tpu.vector_store %arg9[%c0_64, %c0_65, %c32], %82 {strides = array<i32>} : memref<1x8x256xf32, #tpu.memory_space<vmem>>, vector<1x4x32xf32>,
    %cst_66 = arith.constant dense<0.000000e+00> : vector<4xf32>
    %83 = vector.multi_reduction <add>, %79, %cst_66 [1] : vector<4x32xf32> to vector<4xf32>
    %84 = vector.shape_cast %83 : vector<4xf32> to vector<4x1xf32>
    %85 = arith.addf %58, %84 : vector<4x1xf32>
    %86 = arith.mulf %79, %79 : vector<4x32xf32>
    %cst_67 = arith.constant dense<0.000000e+00> : vector<4xf32>
    %87 = vector.multi_reduction <add>, %86, %cst_67 [1] : vector<4x32xf32> to vector<4xf32>
    %88 = vector.shape_cast %87 : vector<4xf32> to vector<4x1xf32>
    %89 = arith.addf %62, %88 : vector<4x1xf32>
    %c0_68 = arith.constant 0 : index
    %c0_69 = arith.constant 0 : index
    %c16 = arith.constant 16 : index
    %90 = vector.load %arg2[%c0_68, %c0_69, %c16] : memref<1x8x64xf32, #tpu.memory_space<vmem>>, vector<1x8x8xf32>
    %91 = vector.shape_cast %90 : vector<1x8x8xf32> to vector<8x8xf32>
    %cst_70 = arith.constant dense<0.000000e+00> : vector<4x8xf32>
    %92 = tpu.matmul %18, %91, %cst_70 {dimension_numbers = #tpu.dot_dimension_numbers<[1], [0], [0], [1], [0, 0, 1, 1], [], []>} : vector<4x8xf32>, vector<8x8xf32>, vector<4x8xf32> -> vector<4x8xf32>
    %cst_71 = arith.constant dense<0.000000e+00> : vector<4x32xf32>
    %93 = tpu.matmul %92, %26, %cst_71 {dimension_numbers = #tpu.dot_dimension_numbers<[1], [0], [0], [1], [0, 0, 1, 1], [], []>} : vector<4x8xf32>, vector<8x32xf32>, vector<4x32xf32> -> vector<4x32xf32>
    %94 = vector.broadcast %33 : vector<4x1xf32> to vector<4x32xf32>
    %95 = arith.addf %94, %93 : vector<4x32xf32>
    %cst_72 = arith.constant dense<0.000000e+00> : vector<4x8xf32>
    %96 = tpu.matmul %20, %91, %cst_72 {dimension_numbers = #tpu.dot_dimension_numbers<[1], [0], [0], [1], [0, 0, 1, 1], [], []>} : vector<4x8xf32>, vector<8x8xf32>, vector<4x8xf32> -> vector<4x8xf32>
    %cst_73 = arith.constant dense<0.000000e+00> : vector<4x32xf32>
    %97 = tpu.matmul %96, %28, %cst_73 {dimension_numbers = #tpu.dot_dimension_numbers<[1], [0], [0], [1], [0, 0, 1, 1], [], []>} : vector<4x8xf32>, vector<8x32xf32>, vector<4x32xf32> -> vector<4x32xf32>
    %98 = arith.addf %95, %97 : vector<4x32xf32>
    %cst_74 = arith.constant dense<0.000000e+00> : vector<4x8xf32>
    %99 = tpu.matmul %22, %91, %cst_74 {dimension_numbers = #tpu.dot_dimension_numbers<[1], [0], [0], [1], [0, 0, 1, 1], [], []>} : vector<4x8xf32>, vector<8x8xf32>, vector<4x8xf32> -> vector<4x8xf32>
    %cst_75 = arith.constant dense<0.000000e+00> : vector<4x32xf32>
    %100 = tpu.matmul %99, %30, %cst_75 {dimension_numbers = #tpu.dot_dimension_numbers<[1], [0], [0], [1], [0, 0, 1, 1], [], []>} : vector<4x8xf32>, vector<8x32xf32>, vector<4x32xf32> -> vector<4x32xf32>
    %101 = arith.addf %98, %100 : vector<4x32xf32>
    %cst_76 = arith.constant dense<0.000000e+00> : vector<4x8xf32>
    %102 = tpu.matmul %24, %91, %cst_76 {dimension_numbers = #tpu.dot_dimension_numbers<[1], [0], [0], [1], [0, 0, 1, 1], [], []>} : vector<4x8xf32>, vector<8x8xf32>, vector<4x8xf32> -> vector<4x8xf32>
    %cst_77 = arith.constant dense<0.000000e+00> : vector<4x32xf32>
    %103 = tpu.matmul %102, %32, %cst_77 {dimension_numbers = #tpu.dot_dimension_numbers<[1], [0], [0], [1], [0, 0, 1, 1], [], []>} : vector<4x8xf32>, vector<8x32xf32>, vector<4x32xf32> -> vector<4x32xf32>
    %104 = arith.addf %101, %103 : vector<4x32xf32>
    %cst_78 = arith.constant 0.000000e+00 : f32
    %105 = vector.broadcast %cst_78 : f32 to vector<4x32xf32>
    %106 = arith.maximumf %104, %105 : vector<4x32xf32>
    %c0_79 = arith.constant 0 : index
    %c0_80 = arith.constant 0 : index
    %c64 = arith.constant 64 : index
    %107 = vector.load %arg9[%c0_79, %c0_80, %c64] : memref<1x8x256xf32, #tpu.memory_space<vmem>>, vector<1x4x32xf32>
    %108 = vector.shape_cast %107 : vector<1x4x32xf32> to vector<4x32xf32>
    %109 = vector.shape_cast %106 : vector<4x32xf32> to vector<1x4x32xf32>
    tpu.vector_store %arg9[%c0_79, %c0_80, %c64], %109 {strides = array<i32>} : memref<1x8x256xf32, #tpu.memory_space<vmem>>, vector<1x4x32xf32>,
    %cst_81 = arith.constant dense<0.000000e+00> : vector<4xf32>
    %110 = vector.multi_reduction <add>, %106, %cst_81 [1] : vector<4x32xf32> to vector<4xf32>
    %111 = vector.shape_cast %110 : vector<4xf32> to vector<4x1xf32>
    %112 = arith.addf %85, %111 : vector<4x1xf32>
    %113 = arith.mulf %106, %106 : vector<4x32xf32>
    %cst_82 = arith.constant dense<0.000000e+00> : vector<4xf32>
    %114 = vector.multi_reduction <add>, %113, %cst_82 [1] : vector<4x32xf32> to vector<4xf32>
    %115 = vector.shape_cast %114 : vector<4xf32> to vector<4x1xf32>
    %116 = arith.addf %89, %115 : vector<4x1xf32>
    %c0_83 = arith.constant 0 : index
    %c0_84 = arith.constant 0 : index
    %c24 = arith.constant 24 : index
    %117 = vector.load %arg2[%c0_83, %c0_84, %c24] : memref<1x8x64xf32, #tpu.memory_space<vmem>>, vector<1x8x8xf32>
    %118 = vector.shape_cast %117 : vector<1x8x8xf32> to vector<8x8xf32>
    %cst_85 = arith.constant dense<0.000000e+00> : vector<4x8xf32>
    %119 = tpu.matmul %18, %118, %cst_85 {dimension_numbers = #tpu.dot_dimension_numbers<[1], [0], [0], [1], [0, 0, 1, 1], [], []>} : vector<4x8xf32>, vector<8x8xf32>, vector<4x8xf32> -> vector<4x8xf32>
    %cst_86 = arith.constant dense<0.000000e+00> : vector<4x32xf32>
    %120 = tpu.matmul %119, %26, %cst_86 {dimension_numbers = #tpu.dot_dimension_numbers<[1], [0], [0], [1], [0, 0, 1, 1], [], []>} : vector<4x8xf32>, vector<8x32xf32>, vector<4x32xf32> -> vector<4x32xf32>
    %121 = vector.broadcast %33 : vector<4x1xf32> to vector<4x32xf32>
    %122 = arith.addf %121, %120 : vector<4x32xf32>
    %cst_87 = arith.constant dense<0.000000e+00> : vector<4x8xf32>
    %123 = tpu.matmul %20, %118, %cst_87 {dimension_numbers = #tpu.dot_dimension_numbers<[1], [0], [0], [1], [0, 0, 1, 1], [], []>} : vector<4x8xf32>, vector<8x8xf32>, vector<4x8xf32> -> vector<4x8xf32>
    %cst_88 = arith.constant dense<0.000000e+00> : vector<4x32xf32>
    %124 = tpu.matmul %123, %28, %cst_88 {dimension_numbers = #tpu.dot_dimension_numbers<[1], [0], [0], [1], [0, 0, 1, 1], [], []>} : vector<4x8xf32>, vector<8x32xf32>, vector<4x32xf32> -> vector<4x32xf32>
    %125 = arith.addf %122, %124 : vector<4x32xf32>
    %cst_89 = arith.constant dense<0.000000e+00> : vector<4x8xf32>
    %126 = tpu.matmul %22, %118, %cst_89 {dimension_numbers = #tpu.dot_dimension_numbers<[1], [0], [0], [1], [0, 0, 1, 1], [], []>} : vector<4x8xf32>, vector<8x8xf32>, vector<4x8xf32> -> vector<4x8xf32>
    %cst_90 = arith.constant dense<0.000000e+00> : vector<4x32xf32>
    %127 = tpu.matmul %126, %30, %cst_90 {dimension_numbers = #tpu.dot_dimension_numbers<[1], [0], [0], [1], [0, 0, 1, 1], [], []>} : vector<4x8xf32>, vector<8x32xf32>, vector<4x32xf32> -> vector<4x32xf32>
    %128 = arith.addf %125, %127 : vector<4x32xf32>
    %cst_91 = arith.constant dense<0.000000e+00> : vector<4x8xf32>
    %129 = tpu.matmul %24, %118, %cst_91 {dimension_numbers = #tpu.dot_dimension_numbers<[1], [0], [0], [1], [0, 0, 1, 1], [], []>} : vector<4x8xf32>, vector<8x8xf32>, vector<4x8xf32> -> vector<4x8xf32>
    %cst_92 = arith.constant dense<0.000000e+00> : vector<4x32xf32>
    %130 = tpu.matmul %129, %32, %cst_92 {dimension_numbers = #tpu.dot_dimension_numbers<[1], [0], [0], [1], [0, 0, 1, 1], [], []>} : vector<4x8xf32>, vector<8x32xf32>, vector<4x32xf32> -> vector<4x32xf32>
    %131 = arith.addf %128, %130 : vector<4x32xf32>
    %cst_93 = arith.constant 0.000000e+00 : f32
    %132 = vector.broadcast %cst_93 : f32 to vector<4x32xf32>
    %133 = arith.maximumf %131, %132 : vector<4x32xf32>
    %c0_94 = arith.constant 0 : index
    %c0_95 = arith.constant 0 : index
    %c96 = arith.constant 96 : index
    %134 = vector.load %arg9[%c0_94, %c0_95, %c96] : memref<1x8x256xf32, #tpu.memory_space<vmem>>, vector<1x4x32xf32>
    %135 = vector.shape_cast %134 : vector<1x4x32xf32> to vector<4x32xf32>
    %136 = vector.shape_cast %133 : vector<4x32xf32> to vector<1x4x32xf32>
    tpu.vector_store %arg9[%c0_94, %c0_95, %c96], %136 {strides = array<i32>} : memref<1x8x256xf32, #tpu.memory_space<vmem>>, vector<1x4x32xf32>,
    %cst_96 = arith.constant dense<0.000000e+00> : vector<4xf32>
    %137 = vector.multi_reduction <add>, %133, %cst_96 [1] : vector<4x32xf32> to vector<4xf32>
    %138 = vector.shape_cast %137 : vector<4xf32> to vector<4x1xf32>
    %139 = arith.addf %112, %138 : vector<4x1xf32>
    %140 = arith.mulf %133, %133 : vector<4x32xf32>
    %cst_97 = arith.constant dense<0.000000e+00> : vector<4xf32>
    %141 = vector.multi_reduction <add>, %140, %cst_97 [1] : vector<4x32xf32> to vector<4xf32>
    %142 = vector.shape_cast %141 : vector<4xf32> to vector<4x1xf32>
    %143 = arith.addf %116, %142 : vector<4x1xf32>
    %c0_98 = arith.constant 0 : index
    %c0_99 = arith.constant 0 : index
    %c32_100 = arith.constant 32 : index
    %144 = vector.load %arg2[%c0_98, %c0_99, %c32_100] : memref<1x8x64xf32, #tpu.memory_space<vmem>>, vector<1x8x8xf32>
    %145 = vector.shape_cast %144 : vector<1x8x8xf32> to vector<8x8xf32>
    %cst_101 = arith.constant dense<0.000000e+00> : vector<4x8xf32>
    %146 = tpu.matmul %18, %145, %cst_101 {dimension_numbers = #tpu.dot_dimension_numbers<[1], [0], [0], [1], [0, 0, 1, 1], [], []>} : vector<4x8xf32>, vector<8x8xf32>, vector<4x8xf32> -> vector<4x8xf32>
    %cst_102 = arith.constant dense<0.000000e+00> : vector<4x32xf32>
    %147 = tpu.matmul %146, %26, %cst_102 {dimension_numbers = #tpu.dot_dimension_numbers<[1], [0], [0], [1], [0, 0, 1, 1], [], []>} : vector<4x8xf32>, vector<8x32xf32>, vector<4x32xf32> -> vector<4x32xf32>
    %148 = vector.broadcast %33 : vector<4x1xf32> to vector<4x32xf32>
    %149 = arith.addf %148, %147 : vector<4x32xf32>
    %cst_103 = arith.constant dense<0.000000e+00> : vector<4x8xf32>
    %150 = tpu.matmul %20, %145, %cst_103 {dimension_numbers = #tpu.dot_dimension_numbers<[1], [0], [0], [1], [0, 0, 1, 1], [], []>} : vector<4x8xf32>, vector<8x8xf32>, vector<4x8xf32> -> vector<4x8xf32>
    %cst_104 = arith.constant dense<0.000000e+00> : vector<4x32xf32>
    %151 = tpu.matmul %150, %28, %cst_104 {dimension_numbers = #tpu.dot_dimension_numbers<[1], [0], [0], [1], [0, 0, 1, 1], [], []>} : vector<4x8xf32>, vector<8x32xf32>, vector<4x32xf32> -> vector<4x32xf32>
    %152 = arith.addf %149, %151 : vector<4x32xf32>
    %cst_105 = arith.constant dense<0.000000e+00> : vector<4x8xf32>
    %153 = tpu.matmul %22, %145, %cst_105 {dimension_numbers = #tpu.dot_dimension_numbers<[1], [0], [0], [1], [0, 0, 1, 1], [], []>} : vector<4x8xf32>, vector<8x8xf32>, vector<4x8xf32> -> vector<4x8xf32>
    %cst_106 = arith.constant dense<0.000000e+00> : vector<4x32xf32>
    %154 = tpu.matmul %153, %30, %cst_106 {dimension_numbers = #tpu.dot_dimension_numbers<[1], [0], [0], [1], [0, 0, 1, 1], [], []>} : vector<4x8xf32>, vector<8x32xf32>, vector<4x32xf32> -> vector<4x32xf32>
    %155 = arith.addf %152, %154 : vector<4x32xf32>
    %cst_107 = arith.constant dense<0.000000e+00> : vector<4x8xf32>
    %156 = tpu.matmul %24, %145, %cst_107 {dimension_numbers = #tpu.dot_dimension_numbers<[1], [0], [0], [1], [0, 0, 1, 1], [], []>} : vector<4x8xf32>, vector<8x8xf32>, vector<4x8xf32> -> vector<4x8xf32>
    %cst_108 = arith.constant dense<0.000000e+00> : vector<4x32xf32>
    %157 = tpu.matmul %156, %32, %cst_108 {dimension_numbers = #tpu.dot_dimension_numbers<[1], [0], [0], [1], [0, 0, 1, 1], [], []>} : vector<4x8xf32>, vector<8x32xf32>, vector<4x32xf32> -> vector<4x32xf32>
    %158 = arith.addf %155, %157 : vector<4x32xf32>
    %cst_109 = arith.constant 0.000000e+00 : f32
    %159 = vector.broadcast %cst_109 : f32 to vector<4x32xf32>
    %160 = arith.maximumf %158, %159 : vector<4x32xf32>
    %c0_110 = arith.constant 0 : index
    %c0_111 = arith.constant 0 : index
    %c128 = arith.constant 128 : index
    %161 = vector.load %arg9[%c0_110, %c0_111, %c128] : memref<1x8x256xf32, #tpu.memory_space<vmem>>, vector<1x4x32xf32>
    %162 = vector.shape_cast %161 : vector<1x4x32xf32> to vector<4x32xf32>
    %163 = vector.shape_cast %160 : vector<4x32xf32> to vector<1x4x32xf32>
    tpu.vector_store %arg9[%c0_110, %c0_111, %c128], %163 {strides = array<i32>} : memref<1x8x256xf32, #tpu.memory_space<vmem>>, vector<1x4x32xf32>,
    %cst_112 = arith.constant dense<0.000000e+00> : vector<4xf32>
    %164 = vector.multi_reduction <add>, %160, %cst_112 [1] : vector<4x32xf32> to vector<4xf32>
    %165 = vector.shape_cast %164 : vector<4xf32> to vector<4x1xf32>
    %166 = arith.addf %139, %165 : vector<4x1xf32>
    %167 = arith.mulf %160, %160 : vector<4x32xf32>
    %cst_113 = arith.constant dense<0.000000e+00> : vector<4xf32>
    %168 = vector.multi_reduction <add>, %167, %cst_113 [1] : vector<4x32xf32> to vector<4xf32>
    %169 = vector.shape_cast %168 : vector<4xf32> to vector<4x1xf32>
    %170 = arith.addf %143, %169 : vector<4x1xf32>
    %c0_114 = arith.constant 0 : index
    %c0_115 = arith.constant 0 : index
    %c40 = arith.constant 40 : index
    %171 = vector.load %arg2[%c0_114, %c0_115, %c40] : memref<1x8x64xf32, #tpu.memory_space<vmem>>, vector<1x8x8xf32>
    %172 = vector.shape_cast %171 : vector<1x8x8xf32> to vector<8x8xf32>
    %cst_116 = arith.constant dense<0.000000e+00> : vector<4x8xf32>
    %173 = tpu.matmul %18, %172, %cst_116 {dimension_numbers = #tpu.dot_dimension_numbers<[1], [0], [0], [1], [0, 0, 1, 1], [], []>} : vector<4x8xf32>, vector<8x8xf32>, vector<4x8xf32> -> vector<4x8xf32>
    %cst_117 = arith.constant dense<0.000000e+00> : vector<4x32xf32>
    %174 = tpu.matmul %173, %26, %cst_117 {dimension_numbers = #tpu.dot_dimension_numbers<[1], [0], [0], [1], [0, 0, 1, 1], [], []>} : vector<4x8xf32>, vector<8x32xf32>, vector<4x32xf32> -> vector<4x32xf32>
    %175 = vector.broadcast %33 : vector<4x1xf32> to vector<4x32xf32>
    %176 = arith.addf %175, %174 : vector<4x32xf32>
    %cst_118 = arith.constant dense<0.000000e+00> : vector<4x8xf32>
    %177 = tpu.matmul %20, %172, %cst_118 {dimension_numbers = #tpu.dot_dimension_numbers<[1], [0], [0], [1], [0, 0, 1, 1], [], []>} : vector<4x8xf32>, vector<8x8xf32>, vector<4x8xf32> -> vector<4x8xf32>
    %cst_119 = arith.constant dense<0.000000e+00> : vector<4x32xf32>
    %178 = tpu.matmul %177, %28, %cst_119 {dimension_numbers = #tpu.dot_dimension_numbers<[1], [0], [0], [1], [0, 0, 1, 1], [], []>} : vector<4x8xf32>, vector<8x32xf32>, vector<4x32xf32> -> vector<4x32xf32>
    %179 = arith.addf %176, %178 : vector<4x32xf32>
    %cst_120 = arith.constant dense<0.000000e+00> : vector<4x8xf32>
    %180 = tpu.matmul %22, %172, %cst_120 {dimension_numbers = #tpu.dot_dimension_numbers<[1], [0], [0], [1], [0, 0, 1, 1], [], []>} : vector<4x8xf32>, vector<8x8xf32>, vector<4x8xf32> -> vector<4x8xf32>
    %cst_121 = arith.constant dense<0.000000e+00> : vector<4x32xf32>
    %181 = tpu.matmul %180, %30, %cst_121 {dimension_numbers = #tpu.dot_dimension_numbers<[1], [0], [0], [1], [0, 0, 1, 1], [], []>} : vector<4x8xf32>, vector<8x32xf32>, vector<4x32xf32> -> vector<4x32xf32>
    %182 = arith.addf %179, %181 : vector<4x32xf32>
    %cst_122 = arith.constant dense<0.000000e+00> : vector<4x8xf32>
    %183 = tpu.matmul %24, %172, %cst_122 {dimension_numbers = #tpu.dot_dimension_numbers<[1], [0], [0], [1], [0, 0, 1, 1], [], []>} : vector<4x8xf32>, vector<8x8xf32>, vector<4x8xf32> -> vector<4x8xf32>
    %cst_123 = arith.constant dense<0.000000e+00> : vector<4x32xf32>
    %184 = tpu.matmul %183, %32, %cst_123 {dimension_numbers = #tpu.dot_dimension_numbers<[1], [0], [0], [1], [0, 0, 1, 1], [], []>} : vector<4x8xf32>, vector<8x32xf32>, vector<4x32xf32> -> vector<4x32xf32>
    %185 = arith.addf %182, %184 : vector<4x32xf32>
    %cst_124 = arith.constant 0.000000e+00 : f32
    %186 = vector.broadcast %cst_124 : f32 to vector<4x32xf32>
    %187 = arith.maximumf %185, %186 : vector<4x32xf32>
    %c0_125 = arith.constant 0 : index
    %c0_126 = arith.constant 0 : index
    %c160 = arith.constant 160 : index
    %188 = vector.load %arg9[%c0_125, %c0_126, %c160] : memref<1x8x256xf32, #tpu.memory_space<vmem>>, vector<1x4x32xf32>
    %189 = vector.shape_cast %188 : vector<1x4x32xf32> to vector<4x32xf32>
    %190 = vector.shape_cast %187 : vector<4x32xf32> to vector<1x4x32xf32>
    tpu.vector_store %arg9[%c0_125, %c0_126, %c160], %190 {strides = array<i32>} : memref<1x8x256xf32, #tpu.memory_space<vmem>>, vector<1x4x32xf32>,
    %cst_127 = arith.constant dense<0.000000e+00> : vector<4xf32>
    %191 = vector.multi_reduction <add>, %187, %cst_127 [1] : vector<4x32xf32> to vector<4xf32>
    %192 = vector.shape_cast %191 : vector<4xf32> to vector<4x1xf32>
    %193 = arith.addf %166, %192 : vector<4x1xf32>
    %194 = arith.mulf %187, %187 : vector<4x32xf32>
    %cst_128 = arith.constant dense<0.000000e+00> : vector<4xf32>
    %195 = vector.multi_reduction <add>, %194, %cst_128 [1] : vector<4x32xf32> to vector<4xf32>
    %196 = vector.shape_cast %195 : vector<4xf32> to vector<4x1xf32>
    %197 = arith.addf %170, %196 : vector<4x1xf32>
    %c0_129 = arith.constant 0 : index
    %c0_130 = arith.constant 0 : index
    %c48 = arith.constant 48 : index
    %198 = vector.load %arg2[%c0_129, %c0_130, %c48] : memref<1x8x64xf32, #tpu.memory_space<vmem>>, vector<1x8x8xf32>
    %199 = vector.shape_cast %198 : vector<1x8x8xf32> to vector<8x8xf32>
    %cst_131 = arith.constant dense<0.000000e+00> : vector<4x8xf32>
    %200 = tpu.matmul %18, %199, %cst_131 {dimension_numbers = #tpu.dot_dimension_numbers<[1], [0], [0], [1], [0, 0, 1, 1], [], []>} : vector<4x8xf32>, vector<8x8xf32>, vector<4x8xf32> -> vector<4x8xf32>
    %cst_132 = arith.constant dense<0.000000e+00> : vector<4x32xf32>
    %201 = tpu.matmul %200, %26, %cst_132 {dimension_numbers = #tpu.dot_dimension_numbers<[1], [0], [0], [1], [0, 0, 1, 1], [], []>} : vector<4x8xf32>, vector<8x32xf32>, vector<4x32xf32> -> vector<4x32xf32>
    %202 = vector.broadcast %33 : vector<4x1xf32> to vector<4x32xf32>
    %203 = arith.addf %202, %201 : vector<4x32xf32>
    %cst_133 = arith.constant dense<0.000000e+00> : vector<4x8xf32>
    %204 = tpu.matmul %20, %199, %cst_133 {dimension_numbers = #tpu.dot_dimension_numbers<[1], [0], [0], [1], [0, 0, 1, 1], [], []>} : vector<4x8xf32>, vector<8x8xf32>, vector<4x8xf32> -> vector<4x8xf32>
    %cst_134 = arith.constant dense<0.000000e+00> : vector<4x32xf32>
    %205 = tpu.matmul %204, %28, %cst_134 {dimension_numbers = #tpu.dot_dimension_numbers<[1], [0], [0], [1], [0, 0, 1, 1], [], []>} : vector<4x8xf32>, vector<8x32xf32>, vector<4x32xf32> -> vector<4x32xf32>
    %206 = arith.addf %203, %205 : vector<4x32xf32>
    %cst_135 = arith.constant dense<0.000000e+00> : vector<4x8xf32>
    %207 = tpu.matmul %22, %199, %cst_135 {dimension_numbers = #tpu.dot_dimension_numbers<[1], [0], [0], [1], [0, 0, 1, 1], [], []>} : vector<4x8xf32>, vector<8x8xf32>, vector<4x8xf32> -> vector<4x8xf32>
    %cst_136 = arith.constant dense<0.000000e+00> : vector<4x32xf32>
    %208 = tpu.matmul %207, %30, %cst_136 {dimension_numbers = #tpu.dot_dimension_numbers<[1], [0], [0], [1], [0, 0, 1, 1], [], []>} : vector<4x8xf32>, vector<8x32xf32>, vector<4x32xf32> -> vector<4x32xf32>
    %209 = arith.addf %206, %208 : vector<4x32xf32>
    %cst_137 = arith.constant dense<0.000000e+00> : vector<4x8xf32>
    %210 = tpu.matmul %24, %199, %cst_137 {dimension_numbers = #tpu.dot_dimension_numbers<[1], [0], [0], [1], [0, 0, 1, 1], [], []>} : vector<4x8xf32>, vector<8x8xf32>, vector<4x8xf32> -> vector<4x8xf32>
    %cst_138 = arith.constant dense<0.000000e+00> : vector<4x32xf32>
    %211 = tpu.matmul %210, %32, %cst_138 {dimension_numbers = #tpu.dot_dimension_numbers<[1], [0], [0], [1], [0, 0, 1, 1], [], []>} : vector<4x8xf32>, vector<8x32xf32>, vector<4x32xf32> -> vector<4x32xf32>
    %212 = arith.addf %209, %211 : vector<4x32xf32>
    %cst_139 = arith.constant 0.000000e+00 : f32
    %213 = vector.broadcast %cst_139 : f32 to vector<4x32xf32>
    %214 = arith.maximumf %212, %213 : vector<4x32xf32>
    %c0_140 = arith.constant 0 : index
    %c0_141 = arith.constant 0 : index
    %c192 = arith.constant 192 : index
    %215 = vector.load %arg9[%c0_140, %c0_141, %c192] : memref<1x8x256xf32, #tpu.memory_space<vmem>>, vector<1x4x32xf32>
    %216 = vector.shape_cast %215 : vector<1x4x32xf32> to vector<4x32xf32>
    %217 = vector.shape_cast %214 : vector<4x32xf32> to vector<1x4x32xf32>
    tpu.vector_store %arg9[%c0_140, %c0_141, %c192], %217 {strides = array<i32>} : memref<1x8x256xf32, #tpu.memory_space<vmem>>, vector<1x4x32xf32>,
    %cst_142 = arith.constant dense<0.000000e+00> : vector<4xf32>
    %218 = vector.multi_reduction <add>, %214, %cst_142 [1] : vector<4x32xf32> to vector<4xf32>
    %219 = vector.shape_cast %218 : vector<4xf32> to vector<4x1xf32>
    %220 = arith.addf %193, %219 : vector<4x1xf32>
    %221 = arith.mulf %214, %214 : vector<4x32xf32>
    %cst_143 = arith.constant dense<0.000000e+00> : vector<4xf32>
    %222 = vector.multi_reduction <add>, %221, %cst_143 [1] : vector<4x32xf32> to vector<4xf32>
    %223 = vector.shape_cast %222 : vector<4xf32> to vector<4x1xf32>
    %224 = arith.addf %197, %223 : vector<4x1xf32>
    %c0_144 = arith.constant 0 : index
    %c0_145 = arith.constant 0 : index
    %c56 = arith.constant 56 : index
    %225 = vector.load %arg2[%c0_144, %c0_145, %c56] : memref<1x8x64xf32, #tpu.memory_space<vmem>>, vector<1x8x8xf32>
    %226 = vector.shape_cast %225 : vector<1x8x8xf32> to vector<8x8xf32>
    %cst_146 = arith.constant dense<0.000000e+00> : vector<4x8xf32>
    %227 = tpu.matmul %18, %226, %cst_146 {dimension_numbers = #tpu.dot_dimension_numbers<[1], [0], [0], [1], [0, 0, 1, 1], [], []>} : vector<4x8xf32>, vector<8x8xf32>, vector<4x8xf32> -> vector<4x8xf32>
    %cst_147 = arith.constant dense<0.000000e+00> : vector<4x32xf32>
    %228 = tpu.matmul %227, %26, %cst_147 {dimension_numbers = #tpu.dot_dimension_numbers<[1], [0], [0], [1], [0, 0, 1, 1], [], []>} : vector<4x8xf32>, vector<8x32xf32>, vector<4x32xf32> -> vector<4x32xf32>
    %229 = vector.broadcast %33 : vector<4x1xf32> to vector<4x32xf32>
    %230 = arith.addf %229, %228 : vector<4x32xf32>
    %cst_148 = arith.constant dense<0.000000e+00> : vector<4x8xf32>
    %231 = tpu.matmul %20, %226, %cst_148 {dimension_numbers = #tpu.dot_dimension_numbers<[1], [0], [0], [1], [0, 0, 1, 1], [], []>} : vector<4x8xf32>, vector<8x8xf32>, vector<4x8xf32> -> vector<4x8xf32>
    %cst_149 = arith.constant dense<0.000000e+00> : vector<4x32xf32>
    %232 = tpu.matmul %231, %28, %cst_149 {dimension_numbers = #tpu.dot_dimension_numbers<[1], [0], [0], [1], [0, 0, 1, 1], [], []>} : vector<4x8xf32>, vector<8x32xf32>, vector<4x32xf32> -> vector<4x32xf32>
    %233 = arith.addf %230, %232 : vector<4x32xf32>
    %cst_150 = arith.constant dense<0.000000e+00> : vector<4x8xf32>
    %234 = tpu.matmul %22, %226, %cst_150 {dimension_numbers = #tpu.dot_dimension_numbers<[1], [0], [0], [1], [0, 0, 1, 1], [], []>} : vector<4x8xf32>, vector<8x8xf32>, vector<4x8xf32> -> vector<4x8xf32>
    %cst_151 = arith.constant dense<0.000000e+00> : vector<4x32xf32>
    %235 = tpu.matmul %234, %30, %cst_151 {dimension_numbers = #tpu.dot_dimension_numbers<[1], [0], [0], [1], [0, 0, 1, 1], [], []>} : vector<4x8xf32>, vector<8x32xf32>, vector<4x32xf32> -> vector<4x32xf32>
    %236 = arith.addf %233, %235 : vector<4x32xf32>
    %cst_152 = arith.constant dense<0.000000e+00> : vector<4x8xf32>
    %237 = tpu.matmul %24, %226, %cst_152 {dimension_numbers = #tpu.dot_dimension_numbers<[1], [0], [0], [1], [0, 0, 1, 1], [], []>} : vector<4x8xf32>, vector<8x8xf32>, vector<4x8xf32> -> vector<4x8xf32>
    %cst_153 = arith.constant dense<0.000000e+00> : vector<4x32xf32>
    %238 = tpu.matmul %237, %32, %cst_153 {dimension_numbers = #tpu.dot_dimension_numbers<[1], [0], [0], [1], [0, 0, 1, 1], [], []>} : vector<4x8xf32>, vector<8x32xf32>, vector<4x32xf32> -> vector<4x32xf32>
    %239 = arith.addf %236, %238 : vector<4x32xf32>
    %cst_154 = arith.constant 0.000000e+00 : f32
    %240 = vector.broadcast %cst_154 : f32 to vector<4x32xf32>
    %241 = arith.maximumf %239, %240 : vector<4x32xf32>
    %c0_155 = arith.constant 0 : index
    %c0_156 = arith.constant 0 : index
    %c224 = arith.constant 224 : index
    %242 = vector.load %arg9[%c0_155, %c0_156, %c224] : memref<1x8x256xf32, #tpu.memory_space<vmem>>, vector<1x4x32xf32>
    %243 = vector.shape_cast %242 : vector<1x4x32xf32> to vector<4x32xf32>
    %244 = vector.shape_cast %241 : vector<4x32xf32> to vector<1x4x32xf32>
    tpu.vector_store %arg9[%c0_155, %c0_156, %c224], %244 {strides = array<i32>} : memref<1x8x256xf32, #tpu.memory_space<vmem>>, vector<1x4x32xf32>,
    %cst_157 = arith.constant dense<0.000000e+00> : vector<4xf32>
    %245 = vector.multi_reduction <add>, %241, %cst_157 [1] : vector<4x32xf32> to vector<4xf32>
    %246 = vector.shape_cast %245 : vector<4xf32> to vector<4x1xf32>
    %247 = arith.addf %220, %246 : vector<4x1xf32>
    %248 = arith.mulf %241, %241 : vector<4x32xf32>
    %cst_158 = arith.constant dense<0.000000e+00> : vector<4xf32>
    %249 = vector.multi_reduction <add>, %248, %cst_158 [1] : vector<4x32xf32> to vector<4xf32>
    %250 = vector.shape_cast %249 : vector<4xf32> to vector<4x1xf32>
    %251 = arith.addf %224, %250 : vector<4x1xf32>
    %c0_159 = arith.constant 0 : index
    %c0_160 = arith.constant 0 : index
    %c0_161 = arith.constant 0 : index
    %c0_162 = arith.constant 0 : index
    %252 = vector.load %arg10[%c0_159, %c0_160, %c0_161, %c0_162] : memref<1x1x8x1xf32, #tpu.memory_space<vmem>>, vector<1x1x4x1xf32>
    %253 = vector.shape_cast %252 : vector<1x1x4x1xf32> to vector<4x1xf32>
    %254 = vector.shape_cast %247 : vector<4x1xf32> to vector<1x1x4x1xf32>
    tpu.vector_store %arg10[%c0_159, %c0_160, %c0_161, %c0_162], %254 {strides = array<i32>} : memref<1x1x8x1xf32, #tpu.memory_space<vmem>>, vector<1x1x4x1xf32>,
    %c0_163 = arith.constant 0 : index
    %c0_164 = arith.constant 0 : index
    %c4_165 = arith.constant 4 : index
    %c0_166 = arith.constant 0 : index
    %255 = vector.load %arg10[%c0_163, %c0_164, %c4_165, %c0_166] : memref<1x1x8x1xf32, #tpu.memory_space<vmem>>, vector<1x1x4x1xf32>
    %256 = vector.shape_cast %255 : vector<1x1x4x1xf32> to vector<4x1xf32>
    %257 = vector.shape_cast %13 : vector<4x1xf32> to vector<1x1x4x1xf32>
    tpu.vector_store %arg10[%c0_163, %c0_164, %c4_165, %c0_166], %257 {strides = array<i32>} : memref<1x1x8x1xf32, #tpu.memory_space<vmem>>, vector<1x1x4x1xf32>,
    %c0_167 = arith.constant 0 : index
    %c0_168 = arith.constant 0 : index
    %c0_169 = arith.constant 0 : index
    %c0_170 = arith.constant 0 : index
    %258 = vector.load %arg11[%c0_167, %c0_168, %c0_169, %c0_170] : memref<1x1x8x1xf32, #tpu.memory_space<vmem>>, vector<1x1x4x1xf32>
    %259 = vector.shape_cast %258 : vector<1x1x4x1xf32> to vector<4x1xf32>
    %260 = vector.shape_cast %251 : vector<4x1xf32> to vector<1x1x4x1xf32>
    tpu.vector_store %arg11[%c0_167, %c0_168, %c0_169, %c0_170], %260 {strides = array<i32>} : memref<1x1x8x1xf32, #tpu.memory_space<vmem>>, vector<1x1x4x1xf32>,
    %c0_171 = arith.constant 0 : index
    %c0_172 = arith.constant 0 : index
    %c4_173 = arith.constant 4 : index
    %c0_174 = arith.constant 0 : index
    %261 = vector.load %arg11[%c0_171, %c0_172, %c4_173, %c0_174] : memref<1x1x8x1xf32, #tpu.memory_space<vmem>>, vector<1x1x4x1xf32>
    %262 = vector.shape_cast %261 : vector<1x1x4x1xf32> to vector<4x1xf32>
    %263 = vector.shape_cast %16 : vector<4x1xf32> to vector<1x1x4x1xf32>
    tpu.vector_store %arg11[%c0_171, %c0_172, %c4_173, %c0_174], %263 {strides = array<i32>} : memref<1x1x8x1xf32, #tpu.memory_space<vmem>>, vector<1x1x4x1xf32>,
    return
  }
  func.func @transform_0(%arg0: i32, %arg1: i32) -> (i32, i32, i32) {
    %c0_i32 = arith.constant 0 : i32
    %c0_i32_0 = arith.constant 0 : i32
    return %arg0, %c0_i32, %arg1 : i32, i32, i32
  }
  func.func @transform_1(%arg0: i32, %arg1: i32) -> (i32, i32, i32) {
    %c0_i32 = arith.constant 0 : i32
    %c0_i32_0 = arith.constant 0 : i32
    return %arg0, %c0_i32, %arg1 : i32, i32, i32
  }
  func.func @transform_2(%arg0: i32, %arg1: i32) -> (i32, i32, i32) {
    %c0_i32 = arith.constant 0 : i32
    %c0_i32_0 = arith.constant 0 : i32
    %c0_i32_1 = arith.constant 0 : i32
    %c0_i32_2 = arith.constant 0 : i32
    return %c0_i32, %c0_i32_0, %c0_i32_1 : i32, i32, i32
  }
  func.func @transform_3(%arg0: i32, %arg1: i32) -> (i32, i32) {
    %c0_i32 = arith.constant 0 : i32
    %c0_i32_0 = arith.constant 0 : i32
    %c0_i32_1 = arith.constant 0 : i32
    return %c0_i32, %c0_i32_0 : i32, i32
  }
  func.func @transform_4(%arg0: i32, %arg1: i32) -> (i32, i32) {
    %c0_i32 = arith.constant 0 : i32
    %c0_i32_0 = arith.constant 0 : i32
    %c0_i32_1 = arith.constant 0 : i32
    return %c0_i32, %c0_i32_0 : i32, i32
  }
  func.func @transform_5(%arg0: i32, %arg1: i32) -> (i32, i32) {
    %c0_i32 = arith.constant 0 : i32
    %c0_i32_0 = arith.constant 0 : i32
    %c0_i32_1 = arith.constant 0 : i32
    return %c0_i32, %c0_i32_0 : i32, i32
  }
  func.func @transform_6(%arg0: i32, %arg1: i32) -> (i32, i32, i32) {
    %c0_i32 = arith.constant 0 : i32
    %c0_i32_0 = arith.constant 0 : i32
    %c0_i32_1 = arith.constant 0 : i32
    %c0_i32_2 = arith.constant 0 : i32
    return %c0_i32, %c0_i32_0, %c0_i32_1 : i32, i32, i32
  }
  func.func @transform_7(%arg0: i32, %arg1: i32) -> (i32, i32, i32) {
    %c0_i32 = arith.constant 0 : i32
    %c0_i32_0 = arith.constant 0 : i32
    return %arg0, %c0_i32, %arg1 : i32, i32, i32
  }
  func.func @transform_8(%arg0: i32, %arg1: i32) -> (i32, i32, i32, i32) {
    %c0_i32 = arith.constant 0 : i32
    %c0_i32_0 = arith.constant 0 : i32
    %c0_i32_1 = arith.constant 0 : i32
    return %arg0, %arg1, %c0_i32, %c0_i32_0 : i32, i32, i32, i32
  }
  func.func @transform_9(%arg0: i32, %arg1: i32) -> (i32, i32, i32, i32) {
    %c0_i32 = arith.constant 0 : i32
    %c0_i32_0 = arith.constant 0 : i32
    %c0_i32_1 = arith.constant 0 : i32
    return %arg0, %arg1, %c0_i32, %c0_i32_0 : i32, i32, i32, i32
  }
}

</mosaic_0001>

<bundles_post_ra>
// kernel: unet_up_block.3
= control target key start
LH: loop header
LB: loop body
LE: loop exit
PB: predicated region body
PF: predicated region fallthrough
CT: control target
= control target key end

     0   :  { %s401_s12 = smov 0   ;;  %s403_s13 = smov 0   ;;  %s437_s0 = inlined_call_operand.vmem [shape: f32[2,8,256], index: 0, kind: input, shape index: {}, may-alias: {0,3}]   ;;  %s438_s1 = inlined_call_operand.vmem [shape: f32[8,1], index: 1, kind: input, shape index: {}]   ;;  %s439_s2 = inlined_call_operand.vmem [shape: f32[8,1], index: 2, kind: input, shape index: {}]   ;;  %s440_s3 = inlined_call_operand.vmem [shape: f32[2,8,256], index: 3, kind: output, shape index: {}, may-alias: {0,3}]  }
   0x1   :  { %s405_s14 = smov 0  }
   0x2 LB: > { %s25_s15 = sadd.s32 1, %s374_s13  ;;  %p321_p0 = scmp.ge.s32.totalorder %s378_s14, 1  ;;  %s378_s14 = sphi %s405_s14, %s13_s14   ;;  %s374_s13 = sphi %s403_s13, %s442_s13   ;;  %s370_s12 = sphi %s401_s12, %s441_s12  }
   0x3   : > { %p27_p1 = scmp.ge.s32.totalorder %s25_s15, 2  ;;  %p158_p2 = scmp.lt.s32.totalorder %s378_s14, 3 }
   0x5   : > { %s444_s15 = smov (%p27_p1, %s25_s15), 0  ;;  %p159_p3 = pnand %p321_p0, %p158_p2 }
   0x6   : > { %v212_v0 = vld [vmem:[%s438_s1] sm:$0xff] (!%p159_p3)  ;;  %v380_v1 = vmov (!%p159_p3), 0   ;;  %p191_p4 = scmp.lt.s32.totalorder (!%p159_p3), %s370_s12, 1 }
   0x7   : > { %162 = sbr.rel (%p159_p3) target bundleno = 143 (0x8f), region = 32  ;;  %355 = vset.pattern.permute.xlu0 (!%p159_p3), %v380_v1  ;;  %v220_v2 = vld [vmem:[%s439_s2] sm:$0xff] (!%p159_p3) }
   0x8   : > { %215 = vperm.xlu0 (!%p159_p3), %355, %v212_v0  }
   0xc   : > { %223 = vperm.xlu0 (!%p159_p3), %355, %v220_v2  }
   0xe   : > { %s446_s12 = smov (!%p191_p4, %s370_s12), 1 }
   0xf   : > { %s328_s20 = sshll.u32 %s446_s12, 4 }
  0x10   : > { %s198_s23 = scalar_lea.vmem %s437_s0, %s328_s20  ;;  %s208_s26 = scalar_lea.vmem %s440_s3, %s328_s20 }
  0x11   : > { %v210_v4 = vld [vmem:[%s198_s23] sm:$0xff]  ;;  %v211_v5 = vld [vmem:[%s198_s23 + $0x8] sm:$0xff] }
  0x87   : > { %v216_v3 = vpop.permute.xlu0 %215 }
  0x88   : > { %v218_v6 = vmul.f32 %v216_v3, %v210_v4  ;;  %v219_v7 = vmul.f32 %v216_v3, %v211_v5 }
  0x8b   : > { %v224_v8 = vpop.permute.xlu0 %223 }
  0x8c   : > { %v226_v9 = vadd.f32 %v224_v8, %v218_v6  ;;  %v227_v10 = vadd.f32 %v224_v8, %v219_v7 }
  0x8e   : > { %228 = vst [vmem:[%s208_s26] sm:$0xff] %v226_v9  ;;  %229 = vst [vmem:[%s208_s26 + $0x8] sm:$0xff] %v227_v10 }
  0x8f PF: > { %s13_s14 = sadd.s32 1, %s378_s14   ;;  %s441_s12 = smov %s374_s13 }
  0x90   : > { %p10_p5 = scmp.ge.s32.totalorder %s13_s14, 4   ;;  %s442_s13 = smov %s444_s15 }
  0x92   :  { %12 = sbr.rel (!%p10_p5) target bundleno = 2 (0x2), region = 62 }

// kernel: unet_up_block.2
= control target key start
LH: loop header
LB: loop body
LE: loop exit
PB: predicated region body
PF: predicated region fallthrough
CT: control target
= control target key end

     0   :  { %s6240_s30 = smov 0   ;;  %s6242_s10 = smov 0   ;;  %s6738_s0 = inlined_call_operand.vmem [shape: f32[2,8,64], index: 0, kind: input, shape index: {}]   ;;  %s6739_s1 = inlined_call_operand.vmem [shape: f32[2,8,256], index: 1, kind: input, shape index: {}]   ;;  %s6740_s2 = inlined_call_operand.vmem [shape: f32[4,4,8], index: 2, kind: input, shape index: {}]   ;;  %s6741_s3 = inlined_call_operand.vmem [shape: f32[4,1], index: 3, kind: input, shape index: {}]   ;;  %s6742_s4 = inlined_call_operand.vmem [shape: f32[4,8], index: 4, kind: input, shape index: {}]   ;;  %s6743_s5 = inlined_call_operand.vmem [shape: f32[4,1], index: 5, kind: input, shape index: {}]   ;;  %s6744_s6 = inlined_call_operand.vmem [shape: f32[4,8,32], index: 6, kind: input, shape index: {}]   ;;  %s6745_s7 = inlined_call_operand.vmem [shape: f32[2,8,256], index: 7, kind: output, shape index: {0}]   ;;  %s6746_s8 = inlined_call_operand.vmem [shape: f32[2,1,8,1], index: 8, kind: output, shape index: {1}]   ;;  %s6747_s9 = inlined_call_operand.vmem [shape: f32[2,1,8,1], index: 9, kind: output, shape index: {2}]  }
   0x1   :  { %s6244_s11 = smov 0  }
   0x2 LB: > { %s32_s12 = sadd.s32 1, %s6172_s10  ;;  %p5529_p0 = scmp.ge.s32.totalorder %s6176_s11, 1  ;;  %s6176_s11 = sphi %s6244_s11, %s20_s11   ;;  %s6172_s10 = sphi %s6242_s10, %s6749_s10   ;;  %s6168_s30 = sphi %s6240_s30, %s6748_s30  }
   0x3   : > { %p34_p1 = scmp.ge.s32.totalorder %s32_s12, 2  ;;  %p331_p2 = scmp.lt.s32.totalorder %s6176_s11, 3 }
   0x5   : > { %s6751_s12 = smov (%p34_p1, %s32_s12), 0  ;;  %p332_p3 = pnand %p5529_p0, %p331_p2 }
   0x6   : > { %p396_p4 = scmp.lt.s32.totalorder (!%p332_p3), %s6168_s30, 1  ;;  %v6178_v0 = vmov (!%p332_p3), 0.0   ;;  %vm6179_vm0 = vmmov (!%p332_p3), 0   ;;  %vm446_vm1 = vcmask (!%p332_p3), 64512   ;;  %v6274_v2 = vld [vmem:[%s6740_s2] sm:$0xf] (!%p332_p3) }
   0x7   : > { %335 = sbr.rel (%p332_p3) target bundleno = 906 (0x38a), region = 48  ;;  %5740 = vmatprep.subr.mxu1 (!%p332_p3), %v6178_v0  ;;  %5742 = vmatprep.mubr.msk.f32.mxu1 (!%p332_p3), %vm6179_vm0, %v6178_v0  ;;  %s6180_s19 = smov (!%p332_p3), 120   ;;  %v6284_v3 = vld [vmem:[%s6740_s2 + $0x4] sm:$0xf] (!%p332_p3)  ;;  %v6295_v4 = vld [vmem:[%s6740_s2 + $0x8] sm:$0xf] (!%p332_p3) }
   0x8   : > { %514 = vmatprep.mubr.f32.mxu0 (!%p332_p3), %v6178_v0  ;;  %s6181_s20 = smov (!%p332_p3), 104   ;;  %s6182_s23 = smov (!%p332_p3), 112   ;;  %v6305_v5 = vld [vmem:[%s6740_s2 + $0xc] sm:$0xf] (!%p332_p3)  ;;  %v439_v8 = vld [vmem:[%s6742_s4] sm:$0xf] (!%p332_p3) }
   0x9   : > { %s6183_s24 = smov (!%p332_p3), 96   ;;  %s6184_s27 = smov (!%p332_p3), 88   ;;  %v6328_v9 = vld [vmem:[%s6744_s6] sm:$0xff] (!%p332_p3)  ;;  %v6458_v17 = vld [vmem:[%s6744_s6 + $0x8] sm:$0xff] (!%p332_p3)  ;;  %v6478_v22 = vld [vmem:[%s6744_s6 + $0x10] sm:$0xff] (!%p332_p3)  ;;  %v6187_v29 = vmov (!%p332_p3), 0  }
   0xa   : > { %s6185_s28 = smov (!%p332_p3), 80   ;;  %s6186_s15 = smov (!%p332_p3), 72   ;;  %v6492_v27 = vld [vmem:[%s6744_s6 + $0x18] sm:$0xff] (!%p332_p3)  ;;  %v440_v28 = vld [vmem:[%s6743_s5] sm:$0xf] (!%p332_p3)  ;;  %6152 = vset.pattern.permute.xlu1 (!%p332_p3), %v6187_v29  ;;  %6153 = vset.pattern.permute.xlu0 (!%p332_p3), %v6187_v29  ;;  %vm531_vm2 = vcmask (!%p332_p3), 1043456  }
   0xb   : > { %v558_v30 = vld [vmem:[%s6741_s3] sm:$0xf] (!%p332_p3)  ;;  %vm1154_vm3 = vcmask (!%p332_p3), 257024   ;;  %vm5336_vm4 = vcmask (!%p332_p3), 3072   ;;  %vm1751_vm5 = vcmask (!%p332_p3), 519424   ;;  %vm2348_vm6 = vcmask (!%p332_p3), 781824  }
   0xc   : > { %vm2945_vm7 = vcmask (!%p332_p3), 1044224  }
   0xe   : > { %s6753_s30 = smov (!%p396_p4, %s6168_s30), 1 }
   0xf   : > { %s6265_s13 = sshll.u32 %s6753_s30, 3 }
  0x10   : > { %s402_s16 = scalar_lea.vmem %s6738_s0, %s6265_s13 }
  0x11   : > { %v1165_v1 = vld [vmem:[%s402_s16] sm:$0xff]  ;;  %s5610_s16 = sshll.u32 %s6753_s30, 4 }
  0x12   : > { %1167 = vrot.lane.b32.xlu0 %v1165_v1, %s6180_s19  ;;  %2361 = vrot.lane.b32.xlu1 %v1165_v1, %s6181_s20  ;;  %s411_s19 = scalar_lea.vmem %s6739_s1, %s5610_s16  ;;  %s6550_s22 = scalar_lea.vmem %s6745_s7, %s5610_s16 }
  0x13   : > { %5741 = vmatpush3.msra.mxu1 %v1165_v1  ;;  %v438_v6 = vld [vmem:[%s411_s19 + $0x8] sm:$0xff]  ;;  %v437_v7 = vld [vmem:[%s411_s19] sm:$0xff] }
  0x14   : > { %5743 = vmatmul.mubr.msk.f32.vlgmr.msra.gmra.mrb[0].mxu1 %vm446_vm1, %v6274_v2  ;;  %5750 = vmatprep.subr.mxu1 %v6178_v0 }
  0x15   : > { %5751 = vmatpush3.msra.mxu1 %v1165_v1  ;;  %5752 = vmatprep.mubr.msk.f32.mxu1 %vm6179_vm0, %v6178_v0 }
  0x16   : > { %1764 = vrot.lane.b32.xlu0 %v1165_v1, %s6182_s23  ;;  %2958 = vrot.lane.b32.xlu1 %v1165_v1, %s6183_s24  ;;  %s6672_s23 = scalar_lea.vmem %s6747_s9, %s6265_s13 }
  0x17   : > { %5760 = vmatprep.subr.mxu1 %v6178_v0  ;;  %450 = vmatprep.subr.mxu0 %v438_v6 }
  0x18   : > { %5753 = vmatmul.mubr.msk.f32.vlgmr.msra.gmra.mrb[2].mxu1 %vm446_vm1, %v6284_v3  ;;  %451 = vmatpush1.msra.mxu0 %v437_v7 }
  0x19   : > { %5761 = vmatpush3.msra.mxu1 %v1165_v1  ;;  %5762 = vmatprep.mubr.msk.f32.mxu1 %vm6179_vm0, %v6178_v0 }
  0x1a   : > { %5770 = vmatprep.subr.mxu1 %v6178_v0  ;;  %3550 = vrot.lane.b32.xlu0 %v1165_v1, %s6184_s27  ;;  %s6680_s27 = scalar_lea.vmem %s6746_s8, %s6265_s13  ;;  %s6189_s13 = smov 64  }
  0x1b   : > { %4146 = vrot.lane.b32.xlu1 %v1165_v1, %s6185_s28  ;;  %5537 = vmatmul.mubr.msk.f32.vlgmr.msra.gmra.mrb[0].mxu0 %vm446_vm1, %v439_v8  ;;  %s6188_s28 = smov 32  }
  0x1c   : > { %5763 = vmatmul.mubr.msk.f32.vlgmr.msra.gmra.mrb[4].mxu1 %vm446_vm1, %v6295_v4  ;;  %5745 = vmatprep.subr.mxu0 %v6178_v0 }
  0x1d   : > { %5771 = vmatpush3.msra.mxu1 %v1165_v1  ;;  %5772 = vmatprep.mubr.msk.f32.mxu1 %vm6179_vm0, %v6178_v0 }
  0x1e   : > { %5780 = vmatprep.subr.mxu1 %v6178_v0  ;;  %4742 = vrot.lane.b32.xlu0 %v1165_v1, %s6186_s15 }
  0x1f   : > { %5747 = vmatprep.mubr.msk.f32.mxu0 %vm6179_vm0, %v6178_v0  ;;  %5746 = vmatpush3.msra.mxu0 %v6328_v9 }
  0x20   : > { %5773 = vmatmul.mubr.msk.f32.vlgmr.msra.gmra.mrb[6].mxu1 %vm446_vm1, %v6305_v5  ;;  %5755 = vmatprep.subr.mxu0 %v6178_v0 }
  0x21   : > { %5782 = vmatprep.mubr.msk.f32.mxu1 %vm6179_vm0, %v6178_v0  ;;  %443 = vperm.xlu1 %6152, %v440_v28  }
  0x22   : > { %708 = vperm.xlu0 %6153, %v558_v30  }
  0x84   : > { %v1168_v10 = vpop.permute.xlu0 %1167  ;;  %v2362_v12 = vpop.permute.xlu1 %2361 }
  0x85   : > { %5781 = vmatpush3.msra.mxu1 %v1168_v10 }
  0x86   : > { %5783 = vmatmul.mubr.msk.f32.vlgmr.msra.gmra.mrb[8].mxu1 %vm446_vm1, %v6274_v2  ;;  %5790 = vmatprep.subr.mxu1 %v6178_v0 }
  0x87   : > { %5791 = vmatpush3.msra.mxu1 %v1168_v10  ;;  %5792 = vmatprep.mubr.msk.f32.mxu1 %vm6179_vm0, %v6178_v0 }
  0x88   : > { %5800 = vmatprep.subr.mxu1 %v6178_v0  ;;  %v1765_v11 = vpop.permute.xlu0 %1764  ;;  %v2959_v13 = vpop.permute.xlu1 %2958 }
  0x8a   : > { %5793 = vmatmul.mubr.msk.f32.vlgmr.msra.gmra.mrb[10].mxu1 %vm446_vm1, %v6284_v3 }
  0x8b   : > { %5801 = vmatpush3.msra.mxu1 %v1168_v10  ;;  %5802 = vmatprep.mubr.msk.f32.mxu1 %vm6179_vm0, %v6178_v0 }
  0x8c   : > { %5810 = vmatprep.subr.mxu1 %v6178_v0  ;;  %v3551_v14 = vpop.permute.xlu0 %3550 }
  0x8d   : > { %v4147_v15 = vpop.permute.xlu1 %4146 }
  0x8e   : > { %5803 = vmatmul.mubr.msk.f32.vlgmr.msra.gmra.mrb[12].mxu1 %vm446_vm1, %v6295_v4 }
  0x8f   : > { %5811 = vmatpush3.msra.mxu1 %v1168_v10  ;;  %5812 = vmatprep.mubr.msk.f32.mxu1 %vm6179_vm0, %v6178_v0 }
  0x90   : > { %5820 = vmatprep.subr.mxu1 %v6178_v0  ;;  %v4743_v16 = vpop.permute.xlu0 %4742 }
  0x92   : > { %5813 = vmatmul.mubr.msk.f32.vlgmr.msra.gmra.mrb[14].mxu1 %vm446_vm1, %v6305_v5 }
  0x93   : > { %5821 = vmatpush3.msra.mxu1 %v1765_v11  ;;  %5822 = vmatprep.mubr.msk.f32.mxu1 %vm6179_vm0, %v6178_v0 }
  0x94   : > { %5830 = vmatprep.subr.mxu1 %v6178_v0 }
  0x96   : > { %5823 = vmatmul.mubr.msk.f32.vlgmr.msra.gmra.mrb[16].mxu1 %vm446_vm1, %v6274_v2 }
  0x97   : > { %5831 = vmatpush3.msra.mxu1 %v1765_v11  ;;  %5832 = vmatprep.mubr.msk.f32.mxu1 %vm6179_vm0, %v6178_v0 }
  0x98   : > { %5840 = vmatprep.subr.mxu1 %v6178_v0 }
  0x9a   : > { %5833 = vmatmul.mubr.msk.f32.vlgmr.msra.gmra.mrb[18].mxu1 %vm446_vm1, %v6284_v3 }
  0x9b   : > { %5841 = vmatpush3.msra.mxu1 %v1765_v11  ;;  %5842 = vmatprep.mubr.msk.f32.mxu1 %vm6179_vm0, %v6178_v0 }
  0x9c   : > { %5850 = vmatprep.subr.mxu1 %v6178_v0 }
  0x9e   : > { %5843 = vmatmul.mubr.msk.f32.vlgmr.msra.gmra.mrb[20].mxu1 %vm446_vm1, %v6295_v4 }
  0x9f   : > { %5851 = vmatpush3.msra.mxu1 %v1765_v11  ;;  %5852 = vmatprep.mubr.msk.f32.mxu1 %vm6179_vm0, %v6178_v0 }
  0xa0   : > { %5860 = vmatprep.subr.mxu1 %v6178_v0  ;;  %v444_v57 = vpop.permute.xlu1 %443 }
  0xa2   : > { %5853 = vmatmul.mubr.msk.f32.vlgmr.msra.gmra.mrb[22].mxu1 %vm446_vm1, %v6305_v5 }
  0xa3   : > { %5861 = vmatpush3.msra.mxu1 %v2362_v12  ;;  %5862 = vmatprep.mubr.msk.f32.mxu1 %vm6179_vm0, %v6178_v0 }
  0xa4   : > { %5870 = vmatprep.subr.mxu1 %v6178_v0 }
  0xa6   : > { %5863 = vmatmul.mubr.msk.f32.vlgmr.msra.gmra.mrb[24].mxu1 %vm446_vm1, %v6274_v2 }
  0xa7   : > { %5871 = vmatpush3.msra.mxu1 %v2362_v12  ;;  %5872 = vmatprep.mubr.msk.f32.mxu1 %vm6179_vm0, %v6178_v0 }
  0xa8   : > { %5880 = vmatprep.subr.mxu1 %v6178_v0 }
  0xaa   : > { %5873 = vmatmul.mubr.msk.f32.vlgmr.msra.gmra.mrb[26].mxu1 %vm446_vm1, %v6284_v3 }
  0xab   : > { %5881 = vmatpush3.msra.mxu1 %v2362_v12  ;;  %5882 = vmatprep.mubr.msk.f32.mxu1 %vm6179_vm0, %v6178_v0 }
  0xac   : > { %5890 = vmatprep.subr.mxu1 %v6178_v0 }
  0xae   : > { %5883 = vmatmul.mubr.msk.f32.vlgmr.msra.gmra.mrb[28].mxu1 %vm446_vm1, %v6295_v4 }
  0xaf   : > { %5891 = vmatpush3.msra.mxu1 %v2362_v12  ;;  %5892 = vmatprep.mubr.msk.f32.mxu1 %vm6179_vm0, %v6178_v0 }
  0xb0   : > { %5900 = vmatprep.subr.mxu1 %v6178_v0 }
  0xb2   : > { %5893 = vmatmul.mubr.msk.f32.vlgmr.msra.gmra.mrb[30].mxu1 %vm446_vm1, %v6305_v5 }
  0xb3   : > { %5901 = vmatpush3.msra.mxu1 %v2959_v13  ;;  %5902 = vmatprep.mubr.msk.f32.mxu1 %vm6179_vm0, %v6178_v0 }
  0xb4   : > { %5910 = vmatprep.subr.mxu1 %v6178_v0 }
  0xb6   : > { %5903 = vmatmul.mubr.msk.f32.vlgmr.msra.gmra.mrb[32].mxu1 %vm446_vm1, %v6274_v2 }
  0xb7   : > { %5911 = vmatpush3.msra.mxu1 %v2959_v13  ;;  %5912 = vmatprep.mubr.msk.f32.mxu1 %vm6179_vm0, %v6178_v0 }
  0xb8   : > { %5920 = vmatprep.subr.mxu1 %v6178_v0 }
  0xba   : > { %5913 = vmatmul.mubr.msk.f32.vlgmr.msra.gmra.mrb[34].mxu1 %vm446_vm1, %v6284_v3 }
  0xbb   : > { %5921 = vmatpush3.msra.mxu1 %v2959_v13  ;;  %5922 = vmatprep.mubr.msk.f32.mxu1 %vm6179_vm0, %v6178_v0 }
  0xbc   : > { %5930 = vmatprep.subr.mxu1 %v6178_v0 }
  0xbe   : > { %5923 = vmatmul.mubr.msk.f32.vlgmr.msra.gmra.mrb[36].mxu1 %vm446_vm1, %v6295_v4 }
  0xbf   : > { %5931 = vmatpush3.msra.mxu1 %v2959_v13  ;;  %5932 = vmatprep.mubr.msk.f32.mxu1 %vm6179_vm0, %v6178_v0 }
  0xc0   : > { %5940 = vmatprep.subr.mxu1 %v6178_v0 }
  0xc2   : > { %5933 = vmatmul.mubr.msk.f32.vlgmr.msra.gmra.mrb[38].mxu1 %vm446_vm1, %v6305_v5 }
  0xc3   : > { %5941 = vmatpush3.msra.mxu1 %v3551_v14  ;;  %5942 = vmatprep.mubr.msk.f32.mxu1 %vm6179_vm0, %v6178_v0 }
  0xc4   : > { %5950 = vmatprep.subr.mxu1 %v6178_v0 }
  0xc6   : > { %5943 = vmatmul.mubr.msk.f32.vlgmr.msra.gmra.mrb[40].mxu1 %vm446_vm1, %v6274_v2 }
  0xc7   : > { %5951 = vmatpush3.msra.mxu1 %v3551_v14  ;;  %5952 = vmatprep.mubr.msk.f32.mxu1 %vm6179_vm0, %v6178_v0 }
  0xc8   : > { %5960 = vmatprep.subr.mxu1 %v6178_v0 }
  0xca   : > { %5953 = vmatmul.mubr.msk.f32.vlgmr.msra.gmra.mrb[42].mxu1 %vm446_vm1, %v6284_v3 }
  0xcb   : > { %5961 = vmatpush3.msra.mxu1 %v3551_v14  ;;  %5962 = vmatprep.mubr.msk.f32.mxu1 %vm6179_vm0, %v6178_v0 }
  0xcc   : > { %5970 = vmatprep.subr.mxu1 %v6178_v0 }
  0xce   : > { %5963 = vmatmul.mubr.msk.f32.vlgmr.msra.gmra.mrb[44].mxu1 %vm446_vm1, %v6295_v4 }
  0xcf   : > { %5971 = vmatpush3.msra.mxu1 %v3551_v14  ;;  %5972 = vmatprep.mubr.msk.f32.mxu1 %vm6179_vm0, %v6178_v0 }
  0xd0   : > { %5980 = vmatprep.subr.mxu1 %v6178_v0 }
  0xd2   : > { %5973 = vmatmul.mubr.msk.f32.vlgmr.msra.gmra.mrb[46].mxu1 %vm446_vm1, %v6305_v5 }
  0xd3   : > { %5981 = vmatpush3.msra.mxu1 %v4147_v15  ;;  %5982 = vmatprep.mubr.msk.f32.mxu1 %vm6179_vm0, %v6178_v0 }
  0xd4   : > { %5990 = vmatprep.subr.mxu1 %v6178_v0 }
  0xd6   : > { %5983 = vmatmul.mubr.msk.f32.vlgmr.msra.gmra.mrb[48].mxu1 %vm446_vm1, %v6274_v2 }
  0xd7   : > { %5991 = vmatpush3.msra.mxu1 %v4147_v15  ;;  %5992 = vmatprep.mubr.msk.f32.mxu1 %vm6179_vm0, %v6178_v0 }
  0xd8   : > { %6000 = vmatprep.subr.mxu1 %v6178_v0 }
  0xda   : > { %5993 = vmatmul.mubr.msk.f32.vlgmr.msra.gmra.mrb[50].mxu1 %vm446_vm1, %v6284_v3 }
  0xdb   : > { %6001 = vmatpush3.msra.mxu1 %v4147_v15  ;;  %6002 = vmatprep.mubr.msk.f32.mxu1 %vm6179_vm0, %v6178_v0 }
  0xdc   : > { %6010 = vmatprep.subr.mxu1 %v6178_v0 }
  0xde   : > { %6003 = vmatmul.mubr.msk.f32.vlgmr.msra.gmra.mrb[52].mxu1 %vm446_vm1, %v6295_v4 }
  0xdf   : > { %6011 = vmatpush3.msra.mxu1 %v4147_v15  ;;  %6012 = vmatprep.mubr.msk.f32.mxu1 %vm6179_vm0, %v6178_v0 }
  0xe0   : > { %6020 = vmatprep.subr.mxu1 %v6178_v0 }
  0xe2   : > { %6013 = vmatmul.mubr.msk.f32.vlgmr.msra.gmra.mrb[54].mxu1 %vm446_vm1, %v6305_v5 }
  0xe3   : > { %6021 = vmatpush3.msra.mxu1 %v4743_v16  ;;  %6022 = vmatprep.mubr.msk.f32.mxu1 %vm6179_vm0, %v6178_v0 }
  0xe4   : > { %6030 = vmatprep.subr.mxu1 %v6178_v0 }
  0xe6   : > { %6023 = vmatmul.mubr.msk.f32.vlgmr.msra.gmra.mrb[56].mxu1 %vm446_vm1, %v6274_v2 }
  0xe7   : > { %v629_v18 = vpop.f32.mrb[0].mxu1  ;;  %6031 = vmatpush3.msra.mxu1 %v4743_v16  ;;  %6032 = vmatprep.mubr.msk.f32.mxu1 %vm6179_vm0, %v6178_v0 }
  0xe8   : > { %5748 = vmatmul.mubr.msk.f32.vlgmr.msra.gmra.mrb[2].mxu0 %vm446_vm1, %v629_v18  ;;  %6040 = vmatprep.subr.mxu1 %v6178_v0  ;;  %v5744_v19 = vpop.f32.mrb[1].mxu1 }
  0xe9   : > { %5756 = vmatpush3.msra.mxu0 %v6458_v17  ;;  %5757 = vmatprep.mubr.msk.f32.mxu0 %vm6179_vm0, %v6178_v0 }
  0xea   : > { %6033 = vmatmul.mubr.msk.f32.vlgmr.msra.gmra.mrb[58].mxu1 %vm446_vm1, %v6284_v3  ;;  %5765 = vmatprep.subr.mxu0 %v6178_v0 }
  0xeb   : > { %6041 = vmatpush3.msra.mxu1 %v4743_v16  ;;  %6042 = vmatprep.mubr.msk.f32.mxu1 %vm6179_vm0, %v6178_v0  ;;  %v781_v20 = vpop.f32.mrb[2].mxu1 }
  0xec   : > { %6050 = vmatprep.subr.mxu1 %v6178_v0  ;;  %v5754_v21 = vpop.f32.mrb[3].mxu1 }
  0xee   : > { %6043 = vmatmul.mubr.msk.f32.vlgmr.msra.gmra.mrb[60].mxu1 %vm446_vm1, %v6295_v4  ;;  %v516_v53 = vpop.f32.mrb[0].mxu0 }
  0xef   : > { %6051 = vmatpush3.msra.mxu1 %v4743_v16  ;;  %v928_v23 = vpop.f32.mrb[4].mxu1  ;;  %6052 = vmatprep.mubr.msk.f32.mxu1 %vm6179_vm0, %v6178_v0  ;;  %v518_v54 = vpop.f32.mrb[1].mxu0  ;;  %v517_v59 = vadd.f32 %v516_v53, %v444_v57 }
  0xf0   : > { %5758 = vmatmul.mubr.msk.f32.vlgmr.msra.gmra.mrb[2].mxu0 %vm446_vm1, %v781_v20  ;;  %v5764_v24 = vpop.f32.mrb[5].mxu1  ;;  %v519_v60 = vadd.f32 %v518_v54, %v444_v57 }
  0xf1   : > { %5766 = vmatpush3.msra.mxu0 %v6478_v22  ;;  %5767 = vmatprep.mubr.msk.f32.mxu0 %vm6179_vm0, %v6178_v0  ;;  %v521_v62 = vmax.f32 %v517_v59, 0.0 }
  0xf2   : > { %5775 = vmatprep.subr.mxu0 %v6178_v0  ;;  %6053 = vmatmul.mubr.msk.f32.vlgmr.msra.gmra.mrb[62].mxu1 %vm446_vm1, %v6305_v5  ;;  %v522_v63 = vmax.f32 %v519_v60, 0.0 }
  0xf3   : > { %v1075_v25 = vpop.f32.mrb[6].mxu1  ;;  %v525_v2 = vrot.slane %v521_v62, 4  ;;  %v537_v4 = vmul.f32 %v521_v62, %v521_v62  ;;  %v532_v13 = vsel %vm531_vm2, %v521_v62, 0.0 }
  0xf4   : > { %v5774_v26 = vpop.f32.mrb[7].mxu1  ;;  %v526_v3 = vrot.slane %v522_v63, 4  ;;  %v538_v5 = vmul.f32 %v522_v63, %v522_v63  ;;  %v533_v14 = vsel %vm531_vm2, %v522_v63, 0.0 }
  0xf5   : > { %529 = vst [vmem:[%s6550_s22] sm:$0xf0] %v525_v2  ;;  %v539_v7 = vsel %vm531_vm2, %v537_v4, 0.0  ;;  %v534_v15 = vadd.f32 %v533_v14, %v532_v13 }
  0xf6   : > { %530 = vst [vmem:[%s6550_s22 + $0x8] sm:$0xf0] %v526_v3  ;;  %v540_v8 = vsel %vm531_vm2, %v538_v5, 0.0 }
  0xf7   : > { %v541_v10 = vadd.f32 %v540_v8, %v539_v7  ;;  %535 = vadd.xlane.f32.xlu0 %v534_v15 }
  0xf8   : > { %5768 = vmatmul.mubr.msk.f32.vlgmr.msra.gmra.mrb[2].mxu0 %vm446_vm1, %v928_v23 }
  0xf9   : > { %5776 = vmatpush3.msra.mxu0 %v6492_v27  ;;  %5777 = vmatprep.mubr.msk.f32.mxu0 %vm6179_vm0, %v6178_v0 }
  0xfa   : > { %5785 = vmatprep.subr.mxu0 %v6178_v0  ;;  %542 = vadd.xlane.f32.xlu1 %v541_v10 }
 0x100   : > { %5778 = vmatmul.mubr.msk.f32.vlgmr.msra.gmra.mrb[2].mxu0 %vm446_vm1, %v1075_v25 }
 0x101   : > { %5786 = vmatpush3.msra.mxu0 %v6328_v9  ;;  %5787 = vmatprep.mubr.msk.f32.mxu0 %vm6179_vm0, %v6178_v0 }
 0x102   : > { %5795 = vmatprep.subr.mxu0 %v6178_v0 }
 0x159   : > { %v1236_v31 = vpop.f32.mrb[8].mxu1 }
 0x15a   : > { %5788 = vmatmul.mubr.msk.f32.vlgmr.msra.gmra.mrb[4].mxu0 %vm446_vm1, %v1236_v31  ;;  %v5784_v32 = vpop.f32.mrb[9].mxu1 }
 0x15b   : > { %5796 = vmatpush3.msra.mxu0 %v6458_v17  ;;  %5797 = vmatprep.mubr.msk.f32.mxu0 %vm6179_vm0, %v6178_v0 }
 0x15c   : > { %5805 = vmatprep.subr.mxu0 %v6178_v0 }
 0x15d   : > { %v1380_v33 = vpop.f32.mrb[10].mxu1 }
 0x15e   : > { %v5794_v34 = vpop.f32.mrb[11].mxu1 }
 0x161   : > { %v1524_v35 = vpop.f32.mrb[12].mxu1 }
 0x162   : > { %5798 = vmatmul.mubr.msk.f32.vlgmr.msra.gmra.mrb[4].mxu0 %vm446_vm1, %v1380_v33  ;;  %v5804_v36 = vpop.f32.mrb[13].mxu1 }
 0x163   : > { %5806 = vmatpush3.msra.mxu0 %v6478_v22  ;;  %5807 = vmatprep.mubr.msk.f32.mxu0 %vm6179_vm0, %v6178_v0 }
 0x164   : > { %5815 = vmatprep.subr.mxu0 %v6178_v0 }
 0x165   : > { %v1668_v37 = vpop.f32.mrb[14].mxu1 }
 0x166   : > { %v5814_v38 = vpop.f32.mrb[15].mxu1 }
 0x169   : > { %v1833_v39 = vpop.f32.mrb[16].mxu1 }
 0x16a   : > { %5808 = vmatmul.mubr.msk.f32.vlgmr.msra.gmra.mrb[4].mxu0 %vm446_vm1, %v1524_v35  ;;  %v5824_v40 = vpop.f32.mrb[17].mxu1 }
 0x16b   : > { %5816 = vmatpush3.msra.mxu0 %v6492_v27  ;;  %5817 = vmatprep.mubr.msk.f32.mxu0 %vm6179_vm0, %v6178_v0 }
 0x16c   : > { %5825 = vmatprep.subr.mxu0 %v6178_v0 }
 0x16d   : > { %v1977_v41 = vpop.f32.mrb[18].mxu1 }
 0x16e   : > { %v5834_v42 = vpop.f32.mrb[19].mxu1 }
 0x171   : > { %v2121_v43 = vpop.f32.mrb[20].mxu1 }
 0x172   : > { %5818 = vmatmul.mubr.msk.f32.vlgmr.msra.gmra.mrb[4].mxu0 %vm446_vm1, %v1668_v37  ;;  %v5844_v44 = vpop.f32.mrb[21].mxu1 }
 0x173   : > { %5826 = vmatpush3.msra.mxu0 %v6328_v9  ;;  %5827 = vmatprep.mubr.msk.f32.mxu0 %vm6179_vm0, %v6178_v0 }
 0x174   : > { %5835 = vmatprep.subr.mxu0 %v6178_v0 }
 0x175   : > { %v2265_v45 = vpop.f32.mrb[22].mxu1 }
 0x176   : > { %5828 = vmatmul.mubr.msk.f32.vlgmr.msra.gmra.mrb[6].mxu0 %vm446_vm1, %v1833_v39  ;;  %v5854_v46 = vpop.f32.mrb[23].mxu1 }
 0x177   : > { %5836 = vmatpush3.msra.mxu0 %v6458_v17  ;;  %5837 = vmatprep.mubr.msk.f32.mxu0 %vm6179_vm0, %v6178_v0 }
 0x178   : > { %5845 = vmatprep.subr.mxu0 %v6178_v0 }
 0x179   : > { %v2430_v47 = vpop.f32.mrb[24].mxu1 }
 0x17a   : > { %v5864_v48 = vpop.f32.mrb[25].mxu1 }
 0x17d   : > { %v2574_v49 = vpop.f32.mrb[26].mxu1 }
 0x17e   : > { %5838 = vmatmul.mubr.msk.f32.vlgmr.msra.gmra.mrb[6].mxu0 %vm446_vm1, %v1977_v41  ;;  %v5874_v50 = vpop.f32.mrb[27].mxu1 }
 0x17f   : > { %5846 = vmatpush3.msra.mxu0 %v6478_v22  ;;  %5847 = vmatprep.mubr.msk.f32.mxu0 %vm6179_vm0, %v6178_v0 }
 0x180   : > { %5855 = vmatprep.subr.mxu0 %v6178_v0 }
 0x181   : > { %v2718_v51 = vpop.f32.mrb[28].mxu1 }
 0x182   : > { %v5884_v52 = vpop.f32.mrb[29].mxu1 }
 0x185   : > { %v2862_v55 = vpop.f32.mrb[30].mxu1 }
 0x186   : > { %5848 = vmatmul.mubr.msk.f32.vlgmr.msra.gmra.mrb[6].mxu0 %vm446_vm1, %v2121_v43  ;;  %v5894_v56 = vpop.f32.mrb[31].mxu1 }
 0x187   : > { %5856 = vmatpush3.msra.mxu0 %v6492_v27  ;;  %5857 = vmatprep.mubr.msk.f32.mxu0 %vm6179_vm0, %v6178_v0 }
 0x188   : > { %5865 = vmatprep.subr.mxu0 %v6178_v0 }
 0x189   : > { %v3027_v58 = vpop.f32.mrb[32].mxu1 }
 0x18a   : > { %v5904_v61 = vpop.f32.mrb[33].mxu1 }
 0x18d   : > { %v3171_v1 = vpop.f32.mrb[34].mxu1 }
 0x18e   : > { %5858 = vmatmul.mubr.msk.f32.vlgmr.msra.gmra.mrb[6].mxu0 %vm446_vm1, %v2265_v45  ;;  %v5914_v6 = vpop.f32.mrb[35].mxu1  ;;  %v6610_v45 = vpop.permute.xlu0 %708 }
 0x18f   : > { %5866 = vmatpush3.msra.mxu0 %v6328_v9  ;;  %5867 = vmatprep.mubr.msk.f32.mxu0 %vm6179_vm0, %v6178_v0 }
 0x190   : > { %5875 = vmatprep.subr.mxu0 %v6178_v0 }
 0x191   : > { %v3315_v11 = vpop.f32.mrb[36].mxu1 }
 0x192   : > { %5868 = vmatmul.mubr.msk.f32.vlgmr.msra.gmra.mrb[8].mxu0 %vm446_vm1, %v2430_v47  ;;  %v5924_v12 = vpop.f32.mrb[37].mxu1 }
 0x193   : > { %5876 = vmatpush3.msra.mxu0 %v6458_v17  ;;  %5877 = vmatprep.mubr.msk.f32.mxu0 %vm6179_vm0, %v6178_v0 }
 0x194   : > { %5885 = vmatprep.subr.mxu0 %v6178_v0 }
 0x195   : > { %v3459_v16 = vpop.f32.mrb[38].mxu1 }
 0x196   : > { %v5934_v18 = vpop.f32.mrb[39].mxu1 }
 0x199   : > { %v3619_v19 = vpop.f32.mrb[40].mxu1 }
 0x19a   : > { %5878 = vmatmul.mubr.msk.f32.vlgmr.msra.gmra.mrb[8].mxu0 %vm446_vm1, %v2574_v49  ;;  %v5944_v20 = vpop.f32.mrb[41].mxu1 }
 0x19b   : > { %5886 = vmatpush3.msra.mxu0 %v6478_v22  ;;  %5887 = vmatprep.mubr.msk.f32.mxu0 %vm6179_vm0, %v6178_v0 }
 0x19c   : > { %5895 = vmatprep.subr.mxu0 %v6178_v0 }
 0x19d   : > { %v3763_v21 = vpop.f32.mrb[42].mxu1 }
 0x19e   : > { %v5954_v23 = vpop.f32.mrb[43].mxu1 }
 0x1a1   : > { %v3907_v24 = vpop.f32.mrb[44].mxu1 }
 0x1a2   : > { %5888 = vmatmul.mubr.msk.f32.vlgmr.msra.gmra.mrb[8].mxu0 %vm446_vm1, %v2718_v51  ;;  %v5964_v25 = vpop.f32.mrb[45].mxu1 }
 0x1a3   : > { %5896 = vmatpush3.msra.mxu0 %v6492_v27  ;;  %5897 = vmatprep.mubr.msk.f32.mxu0 %vm6179_vm0, %v6178_v0 }
 0x1a4   : > { %5905 = vmatprep.subr.mxu0 %v6178_v0 }
 0x1a5   : > { %v4051_v26 = vpop.f32.mrb[46].mxu1 }
 0x1a6   : > { %v5974_v28 = vpop.f32.mrb[47].mxu1 }
 0x1a9   : > { %v6578_v29 = vpop.f32.mrb[48].mxu1 }
 0x1aa   : > { %5898 = vmatmul.mubr.msk.f32.vlgmr.msra.gmra.mrb[8].mxu0 %vm446_vm1, %v2862_v55  ;;  %v5984_v30 = vpop.f32.mrb[49].mxu1 }
 0x1ab   : > { %5906 = vmatpush3.msra.mxu0 %v6328_v9  ;;  %5907 = vmatprep.mubr.msk.f32.mxu0 %vm6179_vm0, %v6178_v0 }
 0x1ac   : > { %5915 = vmatprep.subr.mxu0 %v6178_v0 }
 0x1ad   : > { %v4359_v31 = vpop.f32.mrb[50].mxu1 }
 0x1ae   : > { %5908 = vmatmul.mubr.msk.f32.vlgmr.msra.gmra.mrb[10].mxu0 %vm446_vm1, %v3027_v58  ;;  %v5994_v32 = vpop.f32.mrb[51].mxu1 }
 0x1af   : > { %5916 = vmatpush3.msra.mxu0 %v6458_v17  ;;  %5917 = vmatprep.mubr.msk.f32.mxu0 %vm6179_vm0, %v6178_v0 }
 0x1b0   : > { %5925 = vmatprep.subr.mxu0 %v6178_v0 }
 0x1b1   : > { %v4503_v33 = vpop.f32.mrb[52].mxu1 }
 0x1b2   : > { %v6004_v34 = vpop.f32.mrb[53].mxu1 }
 0x1b5   : > { %v4647_v35 = vpop.f32.mrb[54].mxu1 }
 0x1b6   : > { %5918 = vmatmul.mubr.msk.f32.vlgmr.msra.gmra.mrb[10].mxu0 %vm446_vm1, %v3171_v1  ;;  %v6014_v36 = vpop.f32.mrb[55].mxu1 }
 0x1b7   : > { %5926 = vmatpush3.msra.mxu0 %v6478_v22  ;;  %5927 = vmatprep.mubr.msk.f32.mxu0 %vm6179_vm0, %v6178_v0 }
 0x1b8   : > { %5935 = vmatprep.subr.mxu0 %v6178_v0 }
 0x1b9   : > { %v4811_v37 = vpop.f32.mrb[56].mxu1 }
 0x1ba   : > { %v6024_v38 = vpop.f32.mrb[57].mxu1 }
 0x1bd   : > { %v4955_v39 = vpop.f32.mrb[58].mxu1 }
 0x1be   : > { %5928 = vmatmul.mubr.msk.f32.vlgmr.msra.gmra.mrb[10].mxu0 %vm446_vm1, %v3315_v11  ;;  %v6034_v40 = vpop.f32.mrb[59].mxu1 }
 0x1bf   : > { %5936 = vmatpush3.msra.mxu0 %v6492_v27  ;;  %5937 = vmatprep.mubr.msk.f32.mxu0 %vm6179_vm0, %v6178_v0 }
 0x1c0   : > { %5945 = vmatprep.subr.mxu0 %v6178_v0 }
 0x1c1   : > { %v5099_v41 = vpop.f32.mrb[60].mxu1 }
 0x1c2   : > { %v6044_v42 = vpop.f32.mrb[61].mxu1 }
 0x1c5   : > { %v5243_v43 = vpop.f32.mrb[62].mxu1 }
 0x1c6   : > { %5938 = vmatmul.mubr.msk.f32.vlgmr.msra.gmra.mrb[10].mxu0 %vm446_vm1, %v3459_v16  ;;  %v6054_v44 = vpop.f32.mrb[63].mxu1 }
 0x1c7   : > { %5946 = vmatpush3.msra.mxu0 %v6328_v9  ;;  %5947 = vmatprep.mubr.msk.f32.mxu0 %vm6179_vm0, %v6178_v0 }
 0x1c8   : > { %5955 = vmatprep.subr.mxu0 %v6178_v0 }
 0x1ca   : > { %5948 = vmatmul.mubr.msk.f32.vlgmr.msra.gmra.mrb[12].mxu0 %vm446_vm1, %v3619_v19 }
 0x1cb   : > { %5956 = vmatpush3.msra.mxu0 %v6458_v17  ;;  %5957 = vmatprep.mubr.msk.f32.mxu0 %vm6179_vm0, %v6178_v0 }
 0x1cc   : > { %5965 = vmatprep.subr.mxu0 %v6178_v0 }
 0x1d2   : > { %5958 = vmatmul.mubr.msk.f32.vlgmr.msra.gmra.mrb[12].mxu0 %vm446_vm1, %v3763_v21 }
 0x1d3   : > { %5966 = vmatpush3.msra.mxu0 %v6478_v22  ;;  %5967 = vmatprep.mubr.msk.f32.mxu0 %vm6179_vm0, %v6178_v0  ;;  %v1148_v46 = vpop.f32.mrb[2].mxu0 }
 0x1d4   : > { %5975 = vmatprep.subr.mxu0 %v6178_v0  ;;  %v6060_v47 = vadd.f32 %v1148_v46, %v6610_v45  ;;  %v5779_v48 = vpop.f32.mrb[3].mxu0 }
 0x1d6   : > { %v1153_v49 = vmax.f32 %v6060_v47, 0.0 }
 0x1d8   : > { %1155 = vst.msk [vmem:[%s6550_s22] sm:$0xf] %vm1154_vm3, %v1153_v49  ;;  %v1156_v50 = vsel %vm1154_vm3, %v1153_v49, 0.0  ;;  %v1160_v51 = vmul.f32 %v1153_v49, %v1153_v49 }
 0x1d9   : > { %1157 = vadd.xlane.f32.xlu1 %v1156_v50 }
 0x1da   : > { %5968 = vmatmul.mubr.msk.f32.vlgmr.msra.gmra.mrb[12].mxu0 %vm446_vm1, %v3907_v24  ;;  %v1161_v52 = vsel %vm1154_vm3, %v1160_v51, 0.0 }
 0x1db   : > { %5976 = vmatpush3.msra.mxu0 %v6492_v27  ;;  %5977 = vmatprep.mubr.msk.f32.mxu0 %vm6179_vm0, %v6178_v0 }
 0x1dc   : > { %5985 = vmatprep.subr.mxu0 %v6178_v0 }
 0x1dd   : > { %1162 = vadd.xlane.f32.xlu1 %v1161_v52 }
 0x1e2   : > { %5978 = vmatmul.mubr.msk.f32.vlgmr.msra.gmra.mrb[12].mxu0 %vm446_vm1, %v4051_v26 }
 0x1e3   : > { %5986 = vmatpush3.msra.mxu0 %v6328_v9  ;;  %5987 = vmatprep.mubr.msk.f32.mxu0 %vm6179_vm0, %v6178_v0 }
 0x1e4   : > { %5995 = vmatprep.subr.mxu0 %v6178_v0 }
 0x1e6   : > { %5988 = vmatmul.mubr.msk.f32.vlgmr.msra.gmra.mrb[14].mxu0 %vm446_vm1, %v6578_v29 }
 0x1e7   : > { %5996 = vmatpush3.msra.mxu0 %v6458_v17  ;;  %5997 = vmatprep.mubr.msk.f32.mxu0 %vm6179_vm0, %v6178_v0 }
 0x1e8   : > { %6005 = vmatprep.subr.mxu0 %v6178_v0 }
 0x1ee   : > { %5998 = vmatmul.mubr.msk.f32.vlgmr.msra.gmra.mrb[14].mxu0 %vm446_vm1, %v4359_v31 }
 0x1ef   : > { %6006 = vmatpush3.msra.mxu0 %v6478_v22  ;;  %6007 = vmatprep.mubr.msk.f32.mxu0 %vm6179_vm0, %v6178_v0 }
 0x1f0   : > { %6015 = vmatprep.subr.mxu0 %v6178_v0 }
 0x1f6   : > { %6008 = vmatmul.mubr.msk.f32.vlgmr.msra.gmra.mrb[14].mxu0 %vm446_vm1, %v4503_v33 }
 0x1f7   : > { %6016 = vmatpush3.msra.mxu0 %v6492_v27  ;;  %6017 = vmatprep.mubr.msk.f32.mxu0 %vm6179_vm0, %v6178_v0 }
 0x1f8   : > { %6025 = vmatprep.subr.mxu0 %v6178_v0 }
 0x1fe   : > { %6018 = vmatmul.mubr.msk.f32.vlgmr.msra.gmra.mrb[14].mxu0 %vm446_vm1, %v4647_v35 }
 0x1ff   : > { %6026 = vmatpush3.msra.mxu0 %v6328_v9  ;;  %6027 = vmatprep.mubr.msk.f32.mxu0 %vm6179_vm0, %v6178_v0  ;;  %v543_v9 = vpop.xlane.xlu1 %542 }
 0x200   : > { %6035 = vmatprep.subr.mxu0 %v6178_v0  ;;  %5340 = vst.msk [vmem:[%s6672_s23 + $0x4] sm:$0xf] %vm5336_vm4, %v543_v9 }
 0x202   : > { %6028 = vmatmul.mubr.msk.f32.vlgmr.msra.gmra.mrb[16].mxu0 %vm446_vm1, %v4811_v37 }
 0x203   : > { %6036 = vmatpush3.msra.mxu0 %v6458_v17  ;;  %6037 = vmatprep.mubr.msk.f32.mxu0 %vm6179_vm0, %v6178_v0  ;;  %v536_v17 = vpop.xlane.xlu0 %535 }
 0x204   : > { %6045 = vmatprep.subr.mxu0 %v6178_v0  ;;  %5338 = vst.msk [vmem:[%s6680_s27 + $0x4] sm:$0xf] %vm5336_vm4, %v536_v17 }
 0x20a   : > { %6038 = vmatmul.mubr.msk.f32.vlgmr.msra.gmra.mrb[16].mxu0 %vm446_vm1, %v4955_v39 }
 0x20b   : > { %6046 = vmatpush3.msra.mxu0 %v6478_v22  ;;  %6047 = vmatprep.mubr.msk.f32.mxu0 %vm6179_vm0, %v6178_v0 }
 0x20c   : > { %6055 = vmatprep.subr.mxu0 %v6178_v0 }
 0x212   : > { %6048 = vmatmul.mubr.msk.f32.vlgmr.msra.gmra.mrb[16].mxu0 %vm446_vm1, %v5099_v41 }
 0x213   : > { %6056 = vmatpush3.msra.mxu0 %v6492_v27  ;;  %6057 = vmatprep.mubr.msk.f32.mxu0 %vm6179_vm0, %v6178_v0 }
 0x21a   : > { %6058 = vmatmul.mubr.msk.f32.vlgmr.msra.gmra.mrb[16].mxu0 %vm446_vm1, %v5243_v43 }
 0x245   : > { %v1741_v0 = vpop.f32.mrb[4].mxu0 }
 0x246   : > { %v6061_v22 = vadd.f32 %v1741_v0, %v6610_v45  ;;  %v5819_v27 = vpop.f32.mrb[5].mxu0 }
 0x248   : > { %v1746_v53 = vmax.f32 %v6061_v22, 0.0 }
 0x24a   : > { %1748 = vrot.lane.b32.xlu1 %v1746_v53, %s6188_s28  ;;  %v1757_v54 = vmul.f32 %v1746_v53, %v1746_v53  ;;  %v1753_v63 = vsel %vm1154_vm3, %v1746_v53, 0.0 }
 0x24c   : > { %v1758_v55 = vsel %vm1154_vm3, %v1757_v54, 0.0 }
 0x24d   : > { %1759 = vadd.xlane.f32.xlu0 %v1758_v55 }
 0x261   : > { %v2338_v56 = vpop.f32.mrb[6].mxu0 }
 0x262   : > { %v6062_v57 = vadd.f32 %v2338_v56, %v6610_v45  ;;  %v5859_v58 = vpop.f32.mrb[7].mxu0 }
 0x264   : > { %v2343_v59 = vmax.f32 %v6062_v57, 0.0 }
 0x266   : > { %v2350_v60 = vsel %vm1154_vm3, %v2343_v59, 0.0  ;;  %v2354_v61 = vmul.f32 %v2343_v59, %v2343_v59  ;;  %v1158_v16 = vpop.xlane.xlu1 %1157 }
 0x267   : > { %2351 = vadd.xlane.f32.xlu0 %v2350_v60 }
 0x268   : > { %v2355_v62 = vsel %vm1154_vm3, %v2354_v61, 0.0 }
 0x26a   : > { %v1163_v21 = vpop.xlane.xlu1 %1162 }
 0x26b   : > { %2356 = vadd.xlane.f32.xlu0 %v2355_v62 }
 0x26e   : > { %1754 = vadd.xlane.f32.xlu1 %v1753_v63 }
 0x27d   : > { %v2935_v1 = vpop.f32.mrb[8].mxu0 }
 0x27e   : > { %v6063_v2 = vadd.f32 %v2935_v1, %v6610_v45  ;;  %v5899_v3 = vpop.f32.mrb[9].mxu0 }
 0x27f   : > { %2345 = vrot.lane.b32.xlu1 %v2343_v59, %s6189_s13 }
 0x280   : > { %v2940_v4 = vmax.f32 %v6063_v2, 0.0 }
 0x282   : > { %2942 = vrot.lane.b32.xlu0 %v2940_v4, %s6183_s24  ;;  %v2951_v10 = vmul.f32 %v2940_v4, %v2940_v4  ;;  %v2947_v12 = vsel %vm1154_vm3, %v2940_v4, 0.0 }
 0x284   : > { %v2952_v11 = vsel %vm1154_vm3, %v2951_v10, 0.0 }
 0x299   : > { %v3532_v5 = vpop.f32.mrb[10].mxu0 }
 0x29a   : > { %v6064_v6 = vadd.f32 %v3532_v5, %v6610_v45  ;;  %v5939_v7 = vpop.f32.mrb[11].mxu0 }
 0x29c   : > { %v3537_v8 = vmax.f32 %v6064_v6, 0.0 }
 0x29e   : > { %3538 = vst.msk [vmem:[%s6550_s22 + $0x8] sm:$0xf] %vm1154_vm3, %v3537_v8  ;;  %v3539_v13 = vsel %vm1154_vm3, %v3537_v8, 0.0  ;;  %v3543_v14 = vmul.f32 %v3537_v8, %v3537_v8 }
 0x2a0   : > { %v3544_v15 = vsel %vm1154_vm3, %v3543_v14, 0.0 }
 0x2a1   : > { %2953 = vadd.xlane.f32.xlu0 %v2952_v11 }
 0x2a3   : > { %2948 = vadd.xlane.f32.xlu1 %v2947_v12 }
 0x2a7   : > { %3540 = vadd.xlane.f32.xlu1 %v3539_v13 }
 0x2ab   : > { %3545 = vadd.xlane.f32.xlu1 %v3544_v15 }
 0x2b5   : > { %v4124_v18 = vpop.f32.mrb[12].mxu0 }
 0x2b6   : > { %v6065_v19 = vadd.f32 %v4124_v18, %v6610_v45  ;;  %v5979_v20 = vpop.f32.mrb[13].mxu0 }
 0x2b8   : > { %v4129_v23 = vmax.f32 %v6065_v19, 0.0 }
 0x2ba   : > { %v4135_v24 = vsel %vm1154_vm3, %v4129_v23, 0.0  ;;  %v4139_v25 = vmul.f32 %v4129_v23, %v4129_v23 }
 0x2bb   : > { %4136 = vadd.xlane.f32.xlu0 %v4135_v24 }
 0x2bc   : > { %v1749_v26 = vpop.permute.xlu1 %1748  ;;  %4131 = vrot.lane.b32.xlu1 %v4129_v23, %s6188_s28  ;;  %v4140_v28 = vsel %vm1154_vm3, %v4139_v25, 0.0 }
 0x2bd   : > { %1752 = vst.msk [vmem:[%s6550_s22] sm:$0xf] %vm1751_vm5, %v1749_v26 }
 0x2bf   : > { %4141 = vadd.xlane.f32.xlu0 %v4140_v28 }
 0x2d1   : > { %v4720_v29 = vpop.f32.mrb[14].mxu0 }
 0x2d2   : > { %v6066_v30 = vadd.f32 %v4720_v29, %v6610_v45  ;;  %v6019_v31 = vpop.f32.mrb[15].mxu0 }
 0x2d4   : > { %v4725_v32 = vmax.f32 %v6066_v30, 0.0 }
 0x2d6   : > { %4727 = vrot.lane.b32.xlu0 %v4725_v32, %s6189_s13  ;;  %v4731_v35 = vsel %vm1154_vm3, %v4725_v32, 0.0  ;;  %v4735_v40 = vmul.f32 %v4725_v32, %v4725_v32 }
 0x2d8   : > { %v4736_v44 = vsel %vm1154_vm3, %v4735_v40, 0.0 }
 0x2da   : > { %v1760_v33 = vpop.xlane.xlu0 %1759 }
 0x2db   : > { %v1761_v34 = vadd.f32 %v1760_v33, %v1163_v21 }
 0x2e0   : > { %4732 = vadd.xlane.f32.xlu1 %v4731_v35 }
 0x2ed   : > { %v5316_v36 = vpop.f32.mrb[16].mxu0 }
 0x2ee   : > { %v6067_v37 = vadd.f32 %v5316_v36, %v6610_v45  ;;  %v6059_v38 = vpop.f32.mrb[17].mxu0 }
 0x2f0   : > { %v5321_v39 = vmax.f32 %v6067_v37, 0.0 }
 0x2f2   : > { %v5327_v41 = vsel %vm1154_vm3, %v5321_v39, 0.0  ;;  %v5331_v42 = vmul.f32 %v5321_v39, %v5321_v39 }
 0x2f3   : > { %5328 = vadd.xlane.f32.xlu1 %v5327_v41 }
 0x2f4   : > { %v2352_v43 = vpop.xlane.xlu0 %2351  ;;  %v5332_v46 = vsel %vm1154_vm3, %v5331_v42, 0.0 }
 0x2f5   : > { %4737 = vadd.xlane.f32.xlu0 %v4736_v44 }
 0x2f7   : > { %5333 = vadd.xlane.f32.xlu1 %v5332_v46 }
 0x2f8   : > { %v2357_v47 = vpop.xlane.xlu0 %2356 }
 0x2f9   : > { %v2358_v48 = vadd.f32 %v2357_v47, %v1761_v34 }
 0x2fb   : > { %v1755_v49 = vpop.xlane.xlu1 %1754 }
 0x2fc   : > { %v1756_v45 = vadd.f32 %v1755_v49, %v1158_v16  ;;  %v2943_v52 = vpop.permute.xlu0 %2942 }
 0x2fe   : > { %v2353_v50 = vadd.f32 %v2352_v43, %v1756_v45 }
 0x2ff   : > { %v2346_v51 = vpop.permute.xlu1 %2345 }
 0x300   : > { %2349 = vst.msk [vmem:[%s6550_s22] sm:$0xf] %vm2348_vm6, %v2346_v51 }
 0x301   : > { %2946 = vst.msk [vmem:[%s6550_s22] sm:$0xf] %vm2945_vm7, %v2943_v52 }
 0x308   : > { %5323 = vrot.lane.b32.xlu1 %v5321_v39, %s6183_s24 }
 0x32e   : > { %v2954_v0 = vpop.xlane.xlu0 %2953 }
 0x32f   : > { %v2955_v53 = vadd.f32 %v2954_v0, %v2358_v48 }
 0x330   : > { %v2949_v9 = vpop.xlane.xlu1 %2948 }
 0x331   : > { %v2950_v17 = vadd.f32 %v2949_v9, %v2353_v50 }
 0x334   : > { %v3541_v22 = vpop.xlane.xlu1 %3540 }
 0x335   : > { %v3542_v27 = vadd.f32 %v3541_v22, %v2950_v17 }
 0x338   : > { %v3546_v54 = vpop.xlane.xlu1 %3545 }
 0x339   : > { %v3547_v55 = vadd.f32 %v3546_v54, %v2955_v53 }
 0x33c   : > { %v4132_v56 = vpop.permute.xlu1 %4131 }
 0x33d   : > { %4134 = vst.msk [vmem:[%s6550_s22 + $0x8] sm:$0xf] %vm1751_vm5, %v4132_v56 }
 0x348   : > { %v4137_v57 = vpop.xlane.xlu0 %4136 }
 0x349   : > { %v4138_v61 = vadd.f32 %v4137_v57, %v3542_v27 }
 0x34c   : > { %v4142_v58 = vpop.xlane.xlu0 %4141 }
 0x34d   : > { %v4143_v1 = vadd.f32 %v4142_v58, %v3547_v55 }
 0x350   : > { %v4728_v59 = vpop.permute.xlu0 %4727 }
 0x351   : > { %4730 = vst.msk [vmem:[%s6550_s22 + $0x8] sm:$0xf] %vm2348_vm6, %v4728_v59 }
 0x36d   : > { %v4733_v60 = vpop.xlane.xlu1 %4732 }
 0x36e   : > { %v4734_v62 = vadd.f32 %v4733_v60, %v4138_v61 }
 0x380   : > { %v5329_v63 = vpop.xlane.xlu1 %5328 }
 0x381   : > { %v5330_v2 = vadd.f32 %v5329_v63, %v4734_v62 }
 0x382   : > { %v4738_v3 = vpop.xlane.xlu0 %4737 }
 0x383   : > { %5337 = vst.msk [vmem:[%s6680_s27] sm:$0xf] %vm5336_vm4, %v5330_v2  ;;  %v4739_v4 = vadd.f32 %v4738_v3, %v4143_v1 }
 0x384   : > { %v5334_v5 = vpop.xlane.xlu1 %5333 }
 0x385   : > { %v5335_v6 = vadd.f32 %v5334_v5, %v4739_v4 }
 0x387   : > { %5339 = vst.msk [vmem:[%s6672_s23] sm:$0xf] %vm5336_vm4, %v5335_v6 }
 0x388   : > { %v5324_v7 = vpop.permute.xlu1 %5323 }
 0x389   : > { %5326 = vst.msk [vmem:[%s6550_s22 + $0x8] sm:$0xf] %vm2945_vm7, %v5324_v7 }
 0x38a PF: > { %s20_s11 = sadd.s32 1, %s6176_s11   ;;  %s6748_s30 = smov %s6172_s10 }
 0x38b   : > { %p17_p5 = scmp.ge.s32.totalorder %s20_s11, 4   ;;  %s6749_s10 = smov %s6751_s12 }
 0x38d   :  { %19 = sbr.rel (!%p17_p5) target bundleno = 2 (0x2), region = 111 }

</bundles_post_ra>
